<compile_context>
chip_gen: v5e
topology: v5e:2x2
jax: 0.10.0
libtpu: 0.0.40
codegen_flags: <defaults>
</compile_context>

<pallas_src>
import jax
import jax.numpy as jnp
from jax.experimental import pallas as pl
from jax.experimental.pallas import tpu as pltpu

H1 = 128          # linear1 out features (fixed by the module)
H2 = 256          # linear2 out features (fixed by the module)
LANE = 128        # TPU lane width
NEG_PAD = -1e30   # logit value for padded action lanes -> exp() == 0


def _round_up(x, m):
    return (x + m - 1) // m * m


def _actor_kernel(state_ref, w1_ref, consts_ref, w2_ref, w3q_ref, out_ref):
    """Fused Actor forward for one state of the batch (grid axis = batch).

    state_ref  : [1, S, 1]             f32   state (sublane layout for layer 1)
    w1_ref     : [S, 128]              f32   linear1.weight^T
    consts_ref : [1, 128+256+2*S*AP]   f32   [b1 | b2 | b3_blocks | w3 scales]
    w2_ref     : [128, 256]            bf16  linear2.weight^T
    w3q_ref    : [256, S*AP]           int8  linear3.weight^T, blocked + lane
                                             padded, per-column quantized
    out_ref    : [1, S, AP]            f32   softmax probs (padded lanes -> 0)
    """
    _, S, AP = out_ref.shape
    SA = S * AP
    o_b2 = H1
    o_b3 = H1 + H2
    o_sc = H1 + H2 + SA

    # ---- linear1 + relu on the VPU/XLU: w1 is a single [S,128] tile, so an
    #      MXU round trip here would only sit on the serialized critical path.
    x = state_ref[0]                                        # [S, 1] f32
    h = jnp.sum(x * w1_ref[...], axis=0, keepdims=True)     # [1, 128] f32
    h = jnp.maximum(h + consts_ref[:, 0:o_b2], 0.0)

    # ---- linear2 + relu (bf16 MXU inputs, f32 accumulation).
    h = jnp.dot(h.astype(jnp.bfloat16), w2_ref[...],
                preferred_element_type=jnp.float32) + consts_ref[:, o_b2:o_b3]
    h = jnp.maximum(h, 0.0)

    # ---- linear3 in block layout: lanes [s*AP, (s+1)*AP) hold row s's logits.
    #      int8 weights dequantized on the fly (exact in bf16); the per-column
    #      scale is folded in as one VPU multiply on the logits.
    w3_bf16 = w3q_ref[...].astype(jnp.float32).astype(jnp.bfloat16)
    acc = jnp.dot(h.astype(jnp.bfloat16), w3_bf16,
                  preferred_element_type=jnp.float32)        # [1, S*AP] f32
    logits = acc * consts_ref[:, o_sc:o_sc + SA] + consts_ref[:, o_b3:o_sc]

    # ---- vectorized per-row softmax: one sublane relayout of the (S, AP)
    #      tile, then ONE max / exp / sum / divide and ONE dense store.
    #      Padded lanes carry NEG_PAD in the bias -> exp == 0 -> prob == 0.
    lg = logits.reshape(S, AP)                               # [S, AP]
    m = jnp.max(lg, axis=-1, keepdims=True)
    e = jnp.exp(lg - m)
    denom = jnp.sum(e, axis=-1, keepdims=True)
    out_ref[0] = e / denom        # exact normalization (may feed Categorical)


def init_params(key, state_size, num_actions):
    """Synthetic parameters in the torch layout (weight[out, in], bias[out])."""
    S, A = state_size, num_actions
    ks = jax.random.split(key, 6)
    s = 0.05
    return {
        "w1": s * jax.random.normal(ks[0], (H1, S), jnp.float32),
        "b1": s * jax.random.normal(ks[1], (H1,), jnp.float32),
        "w2": s * jax.random.normal(ks[2], (H2, H1), jnp.float32),
        "b2": s * jax.random.normal(ks[3], (H2,), jnp.float32),
        "w3": s * jax.random.normal(ks[4], (S * A, H2), jnp.float32),
        "b3": s * jax.random.normal(ks[5], (S * A,), jnp.float32),
    }


def prepare_params(raw, state_size, num_actions):
    """One-time host-side layout prep: transpose, lane-pad + int8-quantize
    linear3, and concatenate the small f32 constants into one aligned buffer."""
    S, A = state_size, num_actions
    AP = _round_up(A, LANE)

    # linear3.weight^T -> [256, S, A] -> pad actions to AP -> [256, S*AP]
    w3_t = raw["w3"].T.reshape(H2, S, A).astype(jnp.float32)
    w3_blocks = jnp.pad(w3_t, ((0, 0), (0, 0), (0, AP - A))).reshape(H2, S * AP)

    # Symmetric per-output-column int8 quantization (halves the dominant DMA).
    amax = jnp.max(jnp.abs(w3_blocks), axis=0)                    # [S*AP]
    scale = jnp.where(amax > 0.0, amax / 127.0, 1.0)
    w3_q = jnp.clip(jnp.round(w3_blocks / scale), -127, 127).astype(jnp.int8)

    # linear3 bias; padded action lanes get NEG_PAD so softmax yields 0 there.
    b3_blocks = jnp.pad(raw["b3"].reshape(S, A), ((0, 0), (0, AP - A)),
                        constant_values=NEG_PAD).reshape(S * AP)

    # One lane-aligned f32 constants buffer: [b1 | b2 | b3_blocks | scale].
    consts = jnp.concatenate(
        [raw["b1"], raw["b2"], b3_blocks, scale]).astype(jnp.float32)
    consts = consts.reshape(1, H1 + H2 + 2 * S * AP)

    return {
        "S": S, "A": A, "AP": AP,
        "w1_t": raw["w1"].T.astype(jnp.float32),           # [S, 128]
        "consts": consts,                                  # [1, 128+256+2*S*AP]
        "w2_t": raw["w2"].T.astype(jnp.bfloat16),          # [128, 256]
        "w3_q": w3_q,                                      # [256, S*AP] int8
    }


def actor_forward_batch(states, params):
    """states: [B, S] f32 -> softmax probs [B, S, A]."""
    S, A, AP = params["S"], params["A"], params["AP"]
    B = states.shape[0]
    states3 = states.reshape(B, S, 1).astype(jnp.float32)

    operands = (states3, params["w1_t"], params["consts"], params["w2_t"],
                params["w3_q"])

    in_bytes = sum(int(a.size) * a.dtype.itemsize for a in operands)
    out_bytes = B * S * AP * 4
    # Footprint-derived VMEM budget (covers the in-kernel bf16 dequant temp and
    # double-buffered per-state blocks); v7x only has 64 MiB physical VMEM.
    vmem_limit = int(min(96 << 20, max(8 << 20, 4 * (in_bytes + S * AP * 4))))

    cost = pl.CostEstimate(
        flops=int(2 * B * (S * H1 + H1 * H2 + H2 * S * AP)),
        transcendentals=int(B * S * AP),
        bytes_accessed=int(in_bytes + out_bytes))

    grid_spec = pltpu.PrefetchScalarGridSpec(
        num_scalar_prefetch=0,
        grid=(B,),
        in_specs=[
            pl.BlockSpec((1, S, 1), lambda b: (b, 0, 0)),          # per-state
            pl.BlockSpec((S, H1), lambda b: (0, 0)),               # resident
            pl.BlockSpec(params["consts"].shape, lambda b: (0, 0)),
            pl.BlockSpec((H1, H2), lambda b: (0, 0)),
            pl.BlockSpec((H2, S * AP), lambda b: (0, 0)),
        ],
        out_specs=pl.BlockSpec((1, S, AP), lambda b: (b, 0, 0)),
    )

    probs_padded = pl.pallas_call(
        _actor_kernel,
        out_shape=jax.ShapeDtypeStruct((B, S, AP), jnp.float32),
        grid_spec=grid_spec,
        compiler_params=pltpu.CompilerParams(
            dimension_semantics=("parallel",),   # batch shards across v7x TCs
            vmem_limit_bytes=vmem_limit),
        cost_estimate=cost,
    )(*operands)
    return probs_padded[:, :, :A]


def actor_forward(state, params):
    """Single state [S] -> probs [S, A] (the torch module's forward)."""
    return actor_forward_batch(state.reshape(1, -1), params)[0]


def actor_reference(state, raw, state_size, num_actions):
    """Pure-JAX f32 reference matching the torch forward."""
    h = jnp.maximum(raw["w1"] @ state + raw["b1"], 0.0)
    h = jnp.maximum(raw["w2"] @ h + raw["b2"], 0.0)
    logits = (raw["w3"] @ h + raw["b3"]).reshape(state_size, num_actions)
    return jax.nn.softmax(logits, axis=-1)


if __name__ == "__main__":
    key = jax.random.PRNGKey(0)
    k_state, k_params, k_batch = jax.random.split(key, 3)

    STATE_SIZE = 8       # state_size
    NUM_ACTIONS = 10     # action_size (num_actions); linear3 out features = 80

    raw = init_params(k_params, STATE_SIZE, NUM_ACTIONS)
    params = prepare_params(raw, STATE_SIZE, NUM_ACTIONS)

    # --- single-state forward (the torch module's semantics) ----------------
    state = jax.random.normal(k_state, (STATE_SIZE,), jnp.float32)
    probs = jax.block_until_ready(actor_forward(state, params))

    assert probs.shape == (STATE_SIZE, NUM_ACTIONS)
    assert bool(jnp.all(jnp.isfinite(probs)))
    assert bool(jnp.all(probs >= 0.0))
    assert bool(jnp.allclose(jnp.sum(probs, axis=-1), 1.0, atol=1e-4))
    ref = actor_reference(state, raw, STATE_SIZE, NUM_ACTIONS)
    assert bool(jnp.allclose(probs, ref, rtol=5e-2, atol=2e-2))

    # --- batched forward (weights DMA'd once; batch grid axis is parallel) ---
    B = 4
    states = jax.random.normal(k_batch, (B, STATE_SIZE), jnp.float32)
    probs_b = jax.block_until_ready(actor_forward_batch(states, params))

    assert probs_b.shape == (B, STATE_SIZE, NUM_ACTIONS)
    refs_b = jnp.stack([actor_reference(states[i], raw, STATE_SIZE, NUM_ACTIONS)
                        for i in range(B)])
    assert bool(jnp.allclose(jnp.sum(probs_b, axis=-1), 1.0, atol=1e-4))
    assert bool(jnp.allclose(probs_b, refs_b, rtol=5e-2, atol=2e-2))

    print("KERNEL_OK")
</pallas_src>

<mosaic_0001>
module attributes {stable_mosaic.version = 11 : i64} {
  func.func @_actor_kernel(%arg0: i32, %arg1: memref<1x8x1xf32, #tpu.memory_space<vmem>>, %arg2: memref<8x128xf32, #tpu.memory_space<vmem>>, %arg3: memref<1x2432xf32, #tpu.memory_space<vmem>>, %arg4: memref<128x256xbf16, #tpu.memory_space<vmem>>, %arg5: memref<256x1024xi8, #tpu.memory_space<vmem>>, %arg6: memref<1x8x128xf32, #tpu.memory_space<vmem>>) attributes {dimension_semantics = [#tpu.dimension_semantics<parallel>], iteration_bounds = array<i64: 1>, scalar_prefetch = 0 : i64, scratch_operands = 0 : i64, tpu.core_type = #tpu.core_type<tc>, window_params = [{transform_indices = @transform_0, window_bounds = array<i64: 1, 8, 1>}, {pipeline_mode = #tpu.pipeline_mode<synchronous>, transform_indices = @transform_1, window_bounds = array<i64: 8, 128>}, {pipeline_mode = #tpu.pipeline_mode<synchronous>, transform_indices = @transform_2, window_bounds = array<i64: 1, 2432>}, {pipeline_mode = #tpu.pipeline_mode<synchronous>, transform_indices = @transform_3, window_bounds = array<i64: 128, 256>}, {pipeline_mode = #tpu.pipeline_mode<synchronous>, transform_indices = @transform_4, window_bounds = array<i64: 256, 1024>}, {transform_indices = @transform_5, window_bounds = array<i64: 1, 8, 128>}]} {
    %c0 = arith.constant 0 : index
    %c0_0 = arith.constant 0 : index
    %c0_1 = arith.constant 0 : index
    %0 = vector.load %arg1[%c0, %c0_0, %c0_1] : memref<1x8x1xf32, #tpu.memory_space<vmem>>, vector<1x8x1xf32>
    %1 = vector.shape_cast %0 : vector<1x8x1xf32> to vector<8x1xf32>
    %c0_2 = arith.constant 0 : index
    %c0_3 = arith.constant 0 : index
    %2 = vector.load %arg2[%c0_2, %c0_3] : memref<8x128xf32, #tpu.memory_space<vmem>>, vector<8x128xf32>
    %3 = vector.broadcast %1 : vector<8x1xf32> to vector<8x128xf32>
    %4 = arith.mulf %3, %2 : vector<8x128xf32>
    %cst = arith.constant dense<0.000000e+00> : vector<128xf32>
    %5 = vector.multi_reduction <add>, %4, %cst [0] : vector<8x128xf32> to vector<128xf32>
    %6 = vector.shape_cast %5 : vector<128xf32> to vector<1x128xf32>
    %c0_4 = arith.constant 0 : index
    %c0_5 = arith.constant 0 : index
    %7 = vector.load %arg3[%c0_4, %c0_5] : memref<1x2432xf32, #tpu.memory_space<vmem>>, vector<1x128xf32>
    %8 = arith.addf %6, %7 : vector<1x128xf32>
    %cst_6 = arith.constant 0.000000e+00 : f32
    %9 = vector.broadcast %cst_6 : f32 to vector<1x128xf32>
    %10 = arith.maximumf %8, %9 : vector<1x128xf32>
    %11 = arith.truncf %10 : vector<1x128xf32> to vector<1x128xbf16>
    %c0_7 = arith.constant 0 : index
    %c0_8 = arith.constant 0 : index
    %12 = vector.load %arg4[%c0_7, %c0_8] : memref<128x256xbf16, #tpu.memory_space<vmem>>, vector<128x256xbf16>
    %cst_9 = arith.constant dense<0.000000e+00> : vector<1x256xf32>
    %13 = tpu.matmul %11, %12, %cst_9 {dimension_numbers = #tpu.dot_dimension_numbers<[1], [0], [0], [1], [0, 0, 1, 1], [], []>} : vector<1x128xbf16>, vector<128x256xbf16>, vector<1x256xf32> -> vector<1x256xf32>
    %c0_10 = arith.constant 0 : index
    %c128 = arith.constant 128 : index
    %14 = vector.load %arg3[%c0_10, %c128] : memref<1x2432xf32, #tpu.memory_space<vmem>>, vector<1x256xf32>
    %15 = arith.addf %13, %14 : vector<1x256xf32>
    %cst_11 = arith.constant 0.000000e+00 : f32
    %16 = vector.broadcast %cst_11 : f32 to vector<1x256xf32>
    %17 = arith.maximumf %15, %16 : vector<1x256xf32>
    %c0_12 = arith.constant 0 : index
    %c0_13 = arith.constant 0 : index
    %18 = vector.load %arg5[%c0_12, %c0_13] : memref<256x1024xi8, #tpu.memory_space<vmem>>, vector<256x1024xi8>
    %19 = arith.sitofp %18 : vector<256x1024xi8> to vector<256x1024xf32>
    %20 = arith.truncf %19 : vector<256x1024xf32> to vector<256x1024xbf16>
    %21 = arith.truncf %17 : vector<1x256xf32> to vector<1x256xbf16>
    %cst_14 = arith.constant dense<0.000000e+00> : vector<1x1024xf32>
    %22 = tpu.matmul %21, %20, %cst_14 {dimension_numbers = #tpu.dot_dimension_numbers<[1], [0], [0], [1], [0, 0, 1, 1], [], []>} : vector<1x256xbf16>, vector<256x1024xbf16>, vector<1x1024xf32> -> vector<1x1024xf32>
    %c0_15 = arith.constant 0 : index
    %c1408 = arith.constant 1408 : index
    %23 = vector.load %arg3[%c0_15, %c1408] : memref<1x2432xf32, #tpu.memory_space<vmem>>, vector<1x1024xf32>
    %24 = arith.mulf %22, %23 : vector<1x1024xf32>
    %c0_16 = arith.constant 0 : index
    %c384 = arith.constant 384 : index
    %25 = vector.load %arg3[%c0_16, %c384] : memref<1x2432xf32, #tpu.memory_space<vmem>>, vector<1x1024xf32>
    %26 = arith.addf %24, %25 : vector<1x1024xf32>
    %27 = vector.shape_cast %26 : vector<1x1024xf32> to vector<8x128xf32>
    %cst_17 = arith.constant dense<0xFF800000> : vector<8xf32>
    %28 = vector.multi_reduction <maximumf>, %27, %cst_17 [1] : vector<8x128xf32> to vector<8xf32>
    %29 = vector.shape_cast %28 : vector<8xf32> to vector<8x1xf32>
    %30 = vector.broadcast %29 : vector<8x1xf32> to vector<8x128xf32>
    %31 = arith.subf %27, %30 : vector<8x128xf32>
    %32 = math.exp %31 : vector<8x128xf32>
    %cst_18 = arith.constant dense<0.000000e+00> : vector<8xf32>
    %33 = vector.multi_reduction <add>, %32, %cst_18 [1] : vector<8x128xf32> to vector<8xf32>
    %34 = vector.shape_cast %33 : vector<8xf32> to vector<8x1xf32>
    %35 = vector.broadcast %34 : vector<8x1xf32> to vector<8x128xf32>
    %36 = arith.divf %32, %35 : vector<8x128xf32>
    %c0_19 = arith.constant 0 : index
    %c0_20 = arith.constant 0 : index
    %c0_21 = arith.constant 0 : index
    %37 = vector.load %arg6[%c0_19, %c0_20, %c0_21] : memref<1x8x128xf32, #tpu.memory_space<vmem>>, vector<1x8x128xf32>
    %38 = vector.shape_cast %37 : vector<1x8x128xf32> to vector<8x128xf32>
    %39 = vector.shape_cast %36 : vector<8x128xf32> to vector<1x8x128xf32>
    tpu.vector_store %arg6[%c0_19, %c0_20, %c0_21], %39 {strides = array<i32>} : memref<1x8x128xf32, #tpu.memory_space<vmem>>, vector<1x8x128xf32>,
    return
  }
  func.func @transform_0(%arg0: i32) -> (i32, i32, i32) {
    %c0_i32 = arith.constant 0 : i32
    %c0_i32_0 = arith.constant 0 : i32
    %c0_i32_1 = arith.constant 0 : i32
    return %arg0, %c0_i32, %c0_i32_0 : i32, i32, i32
  }
  func.func @transform_1(%arg0: i32) -> (i32, i32) {
    %c0_i32 = arith.constant 0 : i32
    %c0_i32_0 = arith.constant 0 : i32
    %c0_i32_1 = arith.constant 0 : i32
    return %c0_i32, %c0_i32_0 : i32, i32
  }
  func.func @transform_2(%arg0: i32) -> (i32, i32) {
    %c0_i32 = arith.constant 0 : i32
    %c0_i32_0 = arith.constant 0 : i32
    %c0_i32_1 = arith.constant 0 : i32
    return %c0_i32, %c0_i32_0 : i32, i32
  }
  func.func @transform_3(%arg0: i32) -> (i32, i32) {
    %c0_i32 = arith.constant 0 : i32
    %c0_i32_0 = arith.constant 0 : i32
    %c0_i32_1 = arith.constant 0 : i32
    return %c0_i32, %c0_i32_0 : i32, i32
  }
  func.func @transform_4(%arg0: i32) -> (i32, i32) {
    %c0_i32 = arith.constant 0 : i32
    %c0_i32_0 = arith.constant 0 : i32
    %c0_i32_1 = arith.constant 0 : i32
    return %c0_i32, %c0_i32_0 : i32, i32
  }
  func.func @transform_5(%arg0: i32) -> (i32, i32, i32) {
    %c0_i32 = arith.constant 0 : i32
    %c0_i32_0 = arith.constant 0 : i32
    %c0_i32_1 = arith.constant 0 : i32
    return %arg0, %c0_i32, %c0_i32_0 : i32, i32, i32
  }
}

</mosaic_0001>

<bundles_post_ra>
// kernel: tpu_custom_call.1
= control target key start
LH: loop header
LB: loop body
LE: loop exit
PB: predicated region body
PF: predicated region fallthrough
CT: control target
= control target key end

     0   :  { %10 = vsyncpa [#allocation3], 0  ;;  %s2032_s0 = inlined_call_operand.vmem [shape: f32[1,8,1], index: 0, kind: input, shape index: {}]   ;;  %s2033_s1 = inlined_call_operand.vmem [shape: f32[8,128], index: 1, kind: input, shape index: {}]   ;;  %s2034_s2 = inlined_call_operand.hbm [shape: f32[1,2432], index: 2, kind: input, shape index: {}]   ;;  %s2035_s3 = inlined_call_operand.hbm [shape: bf16[128,256], index: 3, kind: input, shape index: {}]   ;;  %s2036_s4 = inlined_call_operand.hbm [shape: s8[256,1024], index: 4, kind: input, shape index: {}]   ;;  %s2037_s5 = inlined_call_operand.hbm [shape: f32[1,8,128], index: 5, kind: output, shape index: {}]  }
   0x1   :  { %11 = vsyncpa [#allocation6], 0  ;;  %s32_s20 = sshll.u32 %s2035_s3, 4  ;;  %s33_s20 = int_to_ptr.hbm [resolvable:$true] %s32_s20 }
   0x2   :  { %12 = vsyncpa [#allocation4], 0  ;;  %s1447_s21 = smov [#allocation5]   ;;  %s22_s25 = sshll.u32 %s2034_s2, 4  ;;  %s23_s25 = int_to_ptr.hbm [resolvable:$true] %s22_s25 }
   0x3   :  { %s34_s22 = sshll.u32 %s1447_s21, 4  ;;  %s1448_s26 = smov 128   ;;  %s35_s22 = int_to_ptr.vmem [resolvable:$true] %s34_s22 }
   0x4   :  { %s1449_s27 = smov 8   ;;  %s1450_s28 = smov [#allocation2]  }
   0x5   :  { %40 = dma.hbm_to_vmem [thread:$0]  %s33_s20, 2048, %s35_s22, [#allocation6], %s1448_s26, %s1448_s26, %s1449_s27  }
   0x6   :  { %s24_s29 = sshll.u32 %s1450_s28, 4  ;;  %s45_s7 = sshll.u32 %s2036_s4, 4  ;;  %s25_s29 = int_to_ptr.vmem [resolvable:$true] %s24_s29  ;;  %s46_s7 = int_to_ptr.hbm [resolvable:$true] %s45_s7 }
   0x7   :  { %27 = dma.hbm_to_vmem [thread:$0]  %s23_s25, 304, %s25_s29, [#allocation3]  }
   0x8   :  { %s1451_s3 = smov [#allocation7]   ;;  %s1452_s9 = smov 1024  }
   0x9   :  { %s47_s8 = sshll.u32 %s1451_s3, 4  ;;  %s1453_s10 = smov 64   ;;  %s48_s8 = int_to_ptr.vmem [resolvable:$true] %s47_s8 }
   0xa   :  { %53 = dma.hbm_to_vmem [thread:$0]  %s46_s7, 8192, %s48_s8, [#allocation6], %s1452_s9, %s1452_s9, %s1453_s10  }
   0xb   :  { %1441 = dma.done.wait [#allocation3], 304  }
   0xc   :  { %1442 = vsyncadd [#allocation3], 4294966992 }
   0xd   :  { %1443 = dma.done.wait [#allocation6], 10240  }
   0xe   :  { %1444 = vsyncadd [#allocation6], 4294957056  ;;  %v1454_v0 = vmov 0   ;;  %v66_v1 = vld [vmem:[%s2032_s0] sm:$0xff]  ;;  %v1330_v3 = vld [vmem:[#allocation5 + $0x74] sm:$0xf0] }
   0xf   :  { %1340 = vset.pattern.permute.xlu0 %v1454_v0  ;;  %v1309_v2 = vld [vmem:[#allocation5 + $0x70] sm:$0xf]  ;;  %v1329_v5 = vld [vmem:[#allocation5 + $0x74] sm:$0xf]  ;;  %v1311_v6 = vld [vmem:[#allocation5 + $0x78] sm:$0xf0] }
  0x10   :  { %70 = vperm.xlu0 %1340, %v66_v1   ;;  %v1310_v4 = vor.u32 %v1330_v3, %v1309_v2  ;;  %v1301_v7 = vld [vmem:[#allocation5 + $0x60] sm:$0xf]  ;;  %v1314_v8 = vor.u32 %v1329_v5, %v1311_v6  ;;  %v1328_v9 = vld [vmem:[#allocation5 + $0x64] sm:$0xf0]  ;;  %v1327_v10 = vld [vmem:[#allocation5 + $0x64] sm:$0xf] }
  0x11   :  { %v1303_v11 = vld [vmem:[#allocation5 + $0x68] sm:$0xf0]  ;;  %v1302_v12 = vor.u32 %v1328_v9, %v1301_v7  ;;  %v1293_v14 = vld [vmem:[#allocation5 + $0x50] sm:$0xf]  ;;  %v1326_v15 = vld [vmem:[#allocation5 + $0x54] sm:$0xf0] }
  0x12   :  { %186 = vmatpush.bf16.msra.mxu0 %v1310_v4  ;;  %199 = vmatpush.bf16.msra.mxu1 %v1314_v8  ;;  %v1306_v13 = vor.u32 %v1327_v10, %v1303_v11  ;;  %v1325_v16 = vld [vmem:[#allocation5 + $0x54] sm:$0xf]  ;;  %v1295_v17 = vld [vmem:[#allocation5 + $0x58] sm:$0xf0]  ;;  %v1294_v18 = vor.u32 %v1326_v15, %v1293_v14  ;;  %v1285_v20 = vld [vmem:[#allocation5 + $0x40] sm:$0xf] }
  0x13   :  { %v1298_v19 = vor.u32 %v1325_v16, %v1295_v17  ;;  %v1324_v21 = vld [vmem:[#allocation5 + $0x44] sm:$0xf0]  ;;  %v1323_v22 = vld [vmem:[#allocation5 + $0x44] sm:$0xf]  ;;  %v1287_v24 = vld [vmem:[#allocation5 + $0x48] sm:$0xf0] }
  0x14   :  { %v1286_v23 = vor.u32 %v1324_v21, %v1285_v20  ;;  %v1290_v25 = vor.u32 %v1323_v22, %v1287_v24  ;;  %v1277_v26 = vld [vmem:[#allocation5 + $0x30] sm:$0xf]  ;;  %v1322_v27 = vld [vmem:[#allocation5 + $0x34] sm:$0xf0]  ;;  %v1321_v28 = vld [vmem:[#allocation5 + $0x34] sm:$0xf] }
  0x15   :  { %v1278_v29 = vor.u32 %v1322_v27, %v1277_v26  ;;  %v1279_v30 = vld [vmem:[#allocation5 + $0x38] sm:$0xf0]  ;;  %v1269_v32 = vld [vmem:[#allocation5 + $0x20] sm:$0xf]  ;;  %v1320_v33 = vld [vmem:[#allocation5 + $0x24] sm:$0xf0] }
  0x16   :  { %187 = vmatpush.bf16.msra.mxu0 %v1302_v12  ;;  %200 = vmatpush.bf16.msra.mxu1 %v1306_v13  ;;  %v1282_v31 = vor.u32 %v1321_v28, %v1279_v30  ;;  %v1319_v34 = vld [vmem:[#allocation5 + $0x24] sm:$0xf]  ;;  %v1270_v35 = vor.u32 %v1320_v33, %v1269_v32  ;;  %v1271_v36 = vld [vmem:[#allocation5 + $0x28] sm:$0xf0]  ;;  %v1261_v38 = vld [vmem:[#allocation5 + $0x10] sm:$0xf] }
  0x17   :  { %v1274_v37 = vor.u32 %v1319_v34, %v1271_v36  ;;  %v1318_v39 = vld [vmem:[#allocation5 + $0x14] sm:$0xf0]  ;;  %v1317_v40 = vld [vmem:[#allocation5 + $0x14] sm:$0xf]  ;;  %v1263_v42 = vld [vmem:[#allocation5 + $0x18] sm:$0xf0] }
  0x18   :  { %v1262_v41 = vor.u32 %v1318_v39, %v1261_v38  ;;  %v1266_v43 = vor.u32 %v1317_v40, %v1263_v42  ;;  %v1253_v44 = vld [vmem:[#allocation5] sm:$0xf]  ;;  %v1316_v45 = vld [vmem:[#allocation5 + $0x4] sm:$0xf0]  ;;  %v1315_v46 = vld [vmem:[#allocation5 + $0x4] sm:$0xf] }
  0x19   :  { %v1255_v47 = vld [vmem:[#allocation5 + $0x8] sm:$0xf0]  ;;  %v1254_v48 = vor.u32 %v1316_v45, %v1253_v44  ;;  %v238_v50 = vld [vmem:[#allocation7 + $0xc0] sm:$0xff]  ;;  %vm1195_vm0 = vcmask 1040384   ;;  %vm1197_vm1 = vcmask 1042434   ;;  %vm1199_vm2 = vcmask 1041408  }
  0x1a   :  { %188 = vmatpush.bf16.msra.mxu0 %v1294_v18  ;;  %201 = vmatpush.bf16.msra.mxu1 %v1298_v19  ;;  %v1258_v49 = vor.u32 %v1315_v46, %v1255_v47  ;;  %v270_v51 = vld [vmem:[#allocation7 + $0x1c0] sm:$0xff]  ;;  %v239_v52 = vld [vmem:[#allocation7 + $0xc8] sm:$0xff]  ;;  %v390_v53 = vunpack.c.2.s8 %v238_v50  ;;  %v398_v54 = vunpack.c.3.s8 %v238_v50  ;;  %v374_v8 = vunpack.c.0.s8 %v238_v50  ;;  %s1240_s15 = sshll.u32 %s2037_s5, 4  ;;  %s1241_s15 = int_to_ptr.hbm [resolvable:$true] %s1240_s15 }
  0x1b   :  { %v518_v55 = vunpack.c.2.s8 %v270_v51  ;;  %v526_v56 = vunpack.c.3.s8 %v270_v51  ;;  %v271_v57 = vld [vmem:[#allocation7 + $0x1c8] sm:$0xff]  ;;  %v391_v58 = vunpack.c.2.s8 %v239_v52  ;;  %v399_v59 = vunpack.c.3.s8 %v239_v52  ;;  %v1498_v14 = vld [vmem:[#allocation7 + $0x80] sm:$0xff] }
  0x1c   :  { %v519_v60 = vunpack.c.2.s8 %v271_v57  ;;  %v527_v61 = vunpack.c.3.s8 %v271_v57  ;;  %v646_v62 = vcvt.s32.f32 %v390_v53  ;;  %v654_v63 = vcvt.s32.f32 %v398_v54  ;;  %v67_v24 = vld [vmem:[%s2033_s1] sm:$0xff]  ;;  %s1455_s1 = smov [#allocation8]  }
  0x1d   :  { %v774_v0 = vcvt.s32.f32 %v518_v55  ;;  %v782_v1 = vcvt.s32.f32 %v526_v56  ;;  %v647_v2 = vcvt.s32.f32 %v391_v58  ;;  %v655_v3 = vcvt.s32.f32 %v399_v59  ;;  %v263_v34 = vld [vmem:[#allocation7 + $0x188] sm:$0xff]  ;;  %s1238_s12 = sshll.u32 %s1455_s1, 4  ;;  %s1239_s12 = int_to_ptr.vmem [resolvable:$true] %s1238_s12 }
  0x1e   :  { %189 = vmatpush.bf16.msra.mxu0 %v1286_v23  ;;  %202 = vmatpush.bf16.msra.mxu1 %v1290_v25  ;;  %v775_v4 = vcvt.s32.f32 %v519_v60  ;;  %v783_v5 = vcvt.s32.f32 %v527_v61  ;;  %v846_v6 = vpack.c.bf16 %v654_v63, %v646_v62  ;;  %v382_v9 = vunpack.c.1.s8 %v238_v50  ;;  %v262_v23 = vld [vmem:[#allocation7 + $0x180] sm:$0xff] }
  0x1f   :  { %v910_v7 = vpack.c.bf16 %v782_v1, %v774_v0  ;;  %v847_v10 = vpack.c.bf16 %v655_v3, %v647_v2  ;;  %v502_v12 = vunpack.c.0.s8 %v270_v51  ;;  %v510_v13 = vunpack.c.1.s8 %v270_v51  ;;  %v222_v0 = vld [vmem:[#allocation7 + $0x40] sm:$0xff] }
  0x20   :  { %v911_v11 = vpack.c.bf16 %v783_v5, %v775_v4  ;;  %920 = vmatpush.bf16.msra.mxu2 %v846_v6  ;;  %v630_v15 = vcvt.s32.f32 %v374_v8  ;;  %v638_v16 = vcvt.s32.f32 %v382_v9  ;;  %v375_v17 = vunpack.c.0.s8 %v239_v52  ;;  %v254_v9 = vld [vmem:[#allocation7 + $0x140] sm:$0xff] }
  0x21   :  { %933 = vmatpush.bf16.msra.mxu3 %v910_v7  ;;  %v383_v18 = vunpack.c.1.s8 %v239_v52  ;;  %v758_v19 = vcvt.s32.f32 %v502_v12  ;;  %v766_v20 = vcvt.s32.f32 %v510_v13  ;;  %v503_v21 = vunpack.c.0.s8 %v271_v57 }
  0x22   :  { %190 = vmatpush.bf16.msra.mxu0 %v1278_v29  ;;  %203 = vmatpush.bf16.msra.mxu1 %v1282_v31  ;;  %v511_v22 = vunpack.c.1.s8 %v271_v57  ;;  %v838_v25 = vpack.c.bf16 %v638_v16, %v630_v15  ;;  %v631_v26 = vcvt.s32.f32 %v375_v17  ;;  %v358_v28 = vunpack.c.2.s8 %v1498_v14  ;;  %v231_v29 = vld [vmem:[#allocation7 + $0x88] sm:$0xff] }
  0x23   :  { %v639_v27 = vcvt.s32.f32 %v383_v18  ;;  %v902_v30 = vpack.c.bf16 %v766_v20, %v758_v19  ;;  %v759_v31 = vcvt.s32.f32 %v503_v21  ;;  %v366_v33 = vunpack.c.3.s8 %v1498_v14 }
  0x24   :  { %v767_v32 = vcvt.s32.f32 %v511_v22  ;;  %921 = vmatpush.bf16.msra.mxu2 %v838_v25  ;;  %v486_v38 = vunpack.c.2.s8 %v262_v23  ;;  %v494_v39 = vunpack.c.3.s8 %v262_v23  ;;  %v367_v46 = vunpack.c.3.s8 %v231_v29 }
  0x25   :  { %v839_v36 = vpack.c.bf16 %v639_v27, %v631_v26  ;;  %934 = vmatpush.bf16.msra.mxu3 %v902_v30  ;;  %v622_v42 = vcvt.s32.f32 %v366_v33  ;;  %v487_v47 = vunpack.c.2.s8 %v263_v34  ;;  %v495_v51 = vunpack.c.3.s8 %v263_v34 }
  0x26   :  { %191 = vmatpush.bf16.msra.mxu0 %v1270_v35  ;;  %204 = vmatpush.bf16.msra.mxu1 %v1274_v37  ;;  %v614_v37 = vcvt.s32.f32 %v358_v28  ;;  %v742_v44 = vcvt.s32.f32 %v486_v38  ;;  %v750_v45 = vcvt.s32.f32 %v494_v39  ;;  %v623_v53 = vcvt.s32.f32 %v367_v46 }
  0x27   :  { %v743_v54 = vcvt.s32.f32 %v487_v47  ;;  %v342_v55 = vunpack.c.0.s8 %v1498_v14  ;;  %v751_v57 = vcvt.s32.f32 %v495_v51  ;;  %v350_v58 = vunpack.c.1.s8 %v1498_v14  ;;  %v223_v14 = vld [vmem:[#allocation7 + $0x48] sm:$0xff] }
  0x28   :  { %v894_v52 = vpack.c.bf16 %v750_v45, %v742_v44  ;;  %v470_v59 = vunpack.c.0.s8 %v262_v23  ;;  %v478_v62 = vunpack.c.1.s8 %v262_v23  ;;  %v343_v63 = vunpack.c.0.s8 %v231_v29  ;;  %v255_v23 = vld [vmem:[#allocation7 + $0x148] sm:$0xff] }
  0x29   :  { %v598_v61 = vcvt.s32.f32 %v342_v55  ;;  %v895_v2 = vpack.c.bf16 %v751_v57, %v743_v54  ;;  %v606_v3 = vcvt.s32.f32 %v350_v58  ;;  %v351_v6 = vunpack.c.1.s8 %v231_v29  ;;  %v246_v58 = vld [vmem:[#allocation7 + $0x100] sm:$0xff] }
  0x2a   :  { %192 = vmatpush.bf16.msra.mxu0 %v1262_v41  ;;  %205 = vmatpush.bf16.msra.mxu1 %v1266_v43  ;;  %v903_v41 = vpack.c.bf16 %v767_v32, %v759_v31  ;;  %v359_v43 = vunpack.c.2.s8 %v231_v29  ;;  %v726_v4 = vcvt.s32.f32 %v470_v59  ;;  %v734_v5 = vcvt.s32.f32 %v478_v62 }
  0x2b   :  { %935 = vmatpush.bf16.msra.mxu3 %v894_v52  ;;  %v599_v7 = vcvt.s32.f32 %v343_v63  ;;  %v471_v8 = vunpack.c.0.s8 %v263_v34  ;;  %v479_v12 = vunpack.c.1.s8 %v263_v34  ;;  %v326_v13 = vunpack.c.2.s8 %v222_v0  ;;  %v215_v63 = vld [vmem:[#allocation7 + $0x8] sm:$0xff] }
  0x2c   :  { %v615_v50 = vcvt.s32.f32 %v359_v43  ;;  %v886_v15 = vpack.c.bf16 %v734_v5, %v726_v4  ;;  %v607_v16 = vcvt.s32.f32 %v351_v6  ;;  %v334_v18 = vunpack.c.3.s8 %v222_v0 }
  0x2d   :  { %v727_v17 = vcvt.s32.f32 %v471_v8  ;;  %v735_v20 = vcvt.s32.f32 %v479_v12  ;;  %v582_v21 = vcvt.s32.f32 %v326_v13  ;;  %v454_v22 = vunpack.c.2.s8 %v254_v9  ;;  %v247_v8 = vld [vmem:[#allocation7 + $0x108] sm:$0xff] }
  0x2e   :  { %193 = vmatpush.bf16.msra.mxu0 %v1254_v48  ;;  %206 = vmatpush.bf16.msra.mxu1 %v1258_v49  ;;  %v830_v49 = vpack.c.bf16 %v622_v42, %v614_v37  ;;  %v831_v60 = vpack.c.bf16 %v623_v53, %v615_v50  ;;  %v823_v25 = vpack.c.bf16 %v607_v16, %v599_v7  ;;  %v590_v26 = vcvt.s32.f32 %v334_v18  ;;  %v214_v53 = vld [vmem:[#allocation7] sm:$0xff] }
  0x2f   :  { %936 = vmatpush.bf16.msra.mxu3 %v886_v15  ;;  %v462_v27 = vunpack.c.3.s8 %v254_v9  ;;  %v327_v28 = vunpack.c.2.s8 %v223_v14  ;;  %v887_v30 = vpack.c.bf16 %v735_v20, %v727_v17  ;;  %v710_v31 = vcvt.s32.f32 %v454_v22 }
  0x30   :  { %922 = vmatpush.bf16.msra.mxu2 %v830_v49  ;;  %v335_v32 = vunpack.c.3.s8 %v223_v14  ;;  %v814_v33 = vpack.c.bf16 %v590_v26, %v582_v21  ;;  %v463_v39 = vunpack.c.3.s8 %v255_v23  ;;  %v318_v43 = vunpack.c.1.s8 %v222_v0 }
  0x31   :  { %v718_v34 = vcvt.s32.f32 %v462_v27  ;;  %v438_v44 = vunpack.c.0.s8 %v254_v9  ;;  %v446_v50 = vunpack.c.1.s8 %v254_v9  ;;  %v311_v52 = vunpack.c.0.s8 %v223_v14 }
  0x32   :  { %946 = vmatpush.bf16.msrb.mxu0 %v847_v10  ;;  %959 = vmatpush.bf16.msrb.mxu1 %v911_v11  ;;  %v822_v11 = vpack.c.bf16 %v606_v3, %v598_v61  ;;  %v591_v38 = vcvt.s32.f32 %v335_v32  ;;  %v719_v47 = vcvt.s32.f32 %v463_v39  ;;  %v574_v49 = vcvt.s32.f32 %v318_v43  ;;  %v241_v43 = vld [vmem:[#allocation7 + $0xd8] sm:$0xff] }
  0x33   :  { %v694_v51 = vcvt.s32.f32 %v438_v44  ;;  %v439_v57 = vunpack.c.0.s8 %v255_v23  ;;  %v567_v61 = vcvt.s32.f32 %v311_v52  ;;  %v447_v62 = vunpack.c.1.s8 %v255_v23  ;;  %v273_v52 = vld [vmem:[#allocation7 + $0x1d8] sm:$0xff] }
  0x34   :  { %923 = vmatpush.bf16.msra.mxu2 %v822_v11  ;;  %v302_v3 = vunpack.c.3.s8 %v214_v53  ;;  %v422_v6 = vunpack.c.2.s8 %v246_v58  ;;  %v430_v7 = vunpack.c.3.s8 %v246_v58  ;;  %v295_v12 = vunpack.c.2.s8 %v215_v63 }
  0x35   :  { %v703_v5 = vcvt.s32.f32 %v447_v62  ;;  %v303_v16 = vunpack.c.3.s8 %v215_v63  ;;  %v431_v20 = vunpack.c.3.s8 %v247_v8  ;;  %v406_v27 = vunpack.c.0.s8 %v246_v58 }
  0x36   :  { %947 = vmatpush.bf16.msrb.mxu0 %v839_v36  ;;  %960 = vmatpush.bf16.msrb.mxu1 %v903_v41  ;;  %v455_v36 = vunpack.c.2.s8 %v255_v23  ;;  %v878_v41 = vpack.c.bf16 %v718_v34, %v710_v31  ;;  %v558_v11 = vcvt.s32.f32 %v302_v3  ;;  %v686_v15 = vcvt.s32.f32 %v430_v7 }
  0x37   :  { %v551_v18 = vcvt.s32.f32 %v295_v12  ;;  %v559_v22 = vcvt.s32.f32 %v303_v16  ;;  %v278_v23 = vunpack.c.0.s8 %v214_v53  ;;  %v687_v26 = vcvt.s32.f32 %v431_v20 }
  0x38   :  { %924 = vmatpush.bf16.msra.mxu2 %v814_v33  ;;  %v711_v42 = vcvt.s32.f32 %v455_v36  ;;  %937 = vmatpush.bf16.msra.mxu3 %v878_v41  ;;  %v279_v32 = vunpack.c.0.s8 %v215_v63  ;;  %v240_v33 = vld [vmem:[#allocation7 + $0xd0] sm:$0xff]  ;;  %v407_v41 = vunpack.c.0.s8 %v247_v8  ;;  %v377_v12 = vunpack.c.0.s8 %v241_v43 }
  0x39   :  { %v376_v3 = vunpack.c.0.s8 %v240_v33  ;;  %vm1201_vm3 = vcmask 1044484   ;;  %vm1203_vm4 = vcmask 1046534   ;;  %vm1205_vm5 = vcmask 1045508  }
  0x3a   :  { %948 = vmatpush.bf16.msrb.mxu0 %v831_v60  ;;  %961 = vmatpush.bf16.msrb.mxu1 %v895_v2  ;;  %v879_v55 = vpack.c.bf16 %v719_v47, %v711_v42  ;;  %v702_v60 = vcvt.s32.f32 %v446_v50  ;;  %v294_v2 = vunpack.c.2.s8 %v214_v53  ;;  %v415_v42 = vunpack.c.1.s8 %v247_v8 }
  0x3b   :  { %v400_v47 = vunpack.c.3.s8 %v240_v33  ;;  %v633_v20 = vcvt.s32.f32 %v377_v12  ;;  %v257_v12 = vld [vmem:[#allocation7 + $0x158] sm:$0xff]  ;;  %vm1207_vm6 = vcmask 1043456  }
  0x3c   :  { %v870_v4 = vpack.c.bf16 %v702_v60, %v694_v51  ;;  %v401_v60 = vunpack.c.3.s8 %v241_v43 }
  0x3e   :  { %949 = vmatpush.bf16.msrb.mxu0 %v823_v25  ;;  %962 = vmatpush.bf16.msrb.mxu1 %v887_v30  ;;  %v534_v30 = vcvt.s32.f32 %v278_v23  ;;  %v233_v23 = vld [vmem:[#allocation7 + $0x98] sm:$0xff] }
  0x3f   :  { %938 = vmatpush.bf16.msra.mxu3 %v870_v4  ;;  %v384_v4 = vunpack.c.1.s8 %v240_v33 }
  0x42   :  { %963 = vmatpush.bf16.msrb.mxu1 %v879_v55  ;;  %v656_v55 = vcvt.s32.f32 %v400_v47 }
  0x82   :  { %v71_v35 = vpop.permute.xlu0 %70 }
  0x83   :  { %v73_v40 = vmul.f32 %v71_v35, %v67_v24  ;;  %v80_v24 = vld [vmem:[#allocation2] sm:$0x1]  ;;  %v583_v35 = vcvt.s32.f32 %v327_v28  ;;  %v414_v28 = vunpack.c.1.s8 %v246_v58 }
  0x85   :  { %v74_v48 = vrot.slane %v73_v40, 4  ;;  %v815_v46 = vpack.c.bf16 %v591_v38, %v583_v35  ;;  %v662_v35 = vcvt.s32.f32 %v406_v27  ;;  %v670_v36 = vcvt.s32.f32 %v414_v28  ;;  %v272_v38 = vld [vmem:[#allocation7 + $0x1d0] sm:$0xff] }
  0x86   :  { %v520_v50 = vunpack.c.2.s8 %v272_v38  ;;  %v528_v51 = vunpack.c.3.s8 %v272_v38  ;;  %v504_v7 = vunpack.c.0.s8 %v272_v38 }
  0x87   :  { %v75_v56 = vadd.f32 %v74_v48, %v73_v40  ;;  %v310_v40 = vunpack.c.0.s8 %v222_v0  ;;  %950 = vmatpush.bf16.msrb.mxu0 %v815_v46  ;;  %v854_v44 = vpack.c.bf16 %v670_v36, %v662_v35  ;;  %v392_v46 = vunpack.c.2.s8 %v240_v33 }
  0x88   :  { %v776_v58 = vcvt.s32.f32 %v520_v50  ;;  %v361_v36 = vunpack.c.2.s8 %v233_v23 }
  0x89   :  { %v76_v1 = vrot.slane %v75_v56, 2  ;;  %v566_v48 = vcvt.s32.f32 %v310_v40  ;;  %v535_v40 = vcvt.s32.f32 %v279_v32  ;;  %v265_v32 = vld [vmem:[#allocation7 + $0x198] sm:$0xff] }
  0x8b   :  { %v77_v10 = vadd.f32 %v76_v1, %v75_v56  ;;  %v319_v56 = vunpack.c.1.s8 %v223_v14  ;;  %v806_v59 = vpack.c.bf16 %v574_v49, %v566_v48  ;;  %v695_v1 = vcvt.s32.f32 %v439_v57 }
  0x8c   :  { %v678_v14 = vcvt.s32.f32 %v422_v6  ;;  %v663_v48 = vcvt.s32.f32 %v407_v41  ;;  %v671_v49 = vcvt.s32.f32 %v415_v42  ;;  %v617_v42 = vcvt.s32.f32 %v361_v36 }
  0x8d   :  { %v78_v19 = vrot.slane %v77_v10, 1  ;;  %v575_v0 = vcvt.s32.f32 %v319_v56  ;;  %925 = vmatpush.bf16.msra.mxu2 %v806_v59  ;;  %v871_v13 = vpack.c.bf16 %v703_v5, %v695_v1  ;;  %v393_v56 = vunpack.c.2.s8 %v241_v43 }
  0x8e   :  { %v862_v21 = vpack.c.bf16 %v686_v15, %v678_v14  ;;  %v855_v57 = vpack.c.bf16 %v671_v49, %v663_v48  ;;  %v784_v59 = vcvt.s32.f32 %v528_v51  ;;  %v760_v15 = vcvt.s32.f32 %v504_v7 }
  0x8f   :  { %v79_v29 = vadd.f32 %v78_v19, %v77_v10  ;;  %v807_v9 = vpack.c.bf16 %v575_v0, %v567_v61  ;;  %v550_v10 = vcvt.s32.f32 %v294_v2  ;;  %v423_v19 = vunpack.c.2.s8 %v247_v8  ;;  %964 = vmatpush.bf16.msrb.mxu1 %v871_v13  ;;  %v232_v13 = vld [vmem:[#allocation7 + $0x90] sm:$0xff] }
  0x90   :  { %939 = vmatpush.bf16.msra.mxu3 %v862_v21  ;;  %v649_v62 = vcvt.s32.f32 %v393_v56  ;;  %v529_v0 = vunpack.c.3.s8 %v273_v52  ;;  %v912_v1 = vpack.c.bf16 %v784_v59, %v776_v58  ;;  %v657_v2 = vcvt.s32.f32 %v401_v60 }
  0x91   :  { %v81_v37 = vadd.f32 %v80_v24, %v79_v29  ;;  %951 = vmatpush.bf16.msrb.mxu0 %v807_v9  ;;  %v798_v17 = vpack.c.bf16 %v558_v11, %v550_v10  ;;  %v286_v24 = vunpack.c.1.s8 %v214_v53  ;;  %v679_v25 = vcvt.s32.f32 %v423_v19 }
  0x92   :  { %v799_v29 = vpack.c.bf16 %v559_v22, %v551_v18  ;;  %v785_v6 = vcvt.s32.f32 %v529_v0  ;;  %v512_v8 = vunpack.c.1.s8 %v272_v38  ;;  %v849_v9 = vpack.c.bf16 %v657_v2, %v649_v62  ;;  %v264_v18 = vld [vmem:[#allocation7 + $0x190] sm:$0xff] }
  0x93   :  { %v82_v45 = vmax.f32 %v81_v37, 0.0  ;;  %926 = vmatpush.bf16.msra.mxu2 %v798_v17  ;;  %v542_v31 = vcvt.s32.f32 %v286_v24  ;;  %v863_v34 = vpack.c.bf16 %v687_v26, %v679_v25  ;;  %v287_v37 = vunpack.c.1.s8 %v215_v63  ;;  %v256_v62 = vld [vmem:[#allocation7 + $0x150] sm:$0xff] }
  0x94   :  { %940 = vmatpush.bf16.msra.mxu3 %v854_v44  ;;  %v521_v63 = vunpack.c.2.s8 %v273_v52  ;;  %v632_v10 = vcvt.s32.f32 %v376_v3  ;;  %v640_v11 = vcvt.s32.f32 %v384_v4  ;;  %v768_v16 = vcvt.s32.f32 %v512_v8  ;;  %v225_v3 = vld [vmem:[#allocation7 + $0x58] sm:$0xff] }
  0x95   :  { %v83_v54 = vpack.c.bf16 %v82_v45, %v82_v45  ;;  %952 = vmatpush.bf16.msrb.mxu0 %v799_v29  ;;  %v790_v39 = vpack.c.bf16 %v542_v31, %v534_v30  ;;  %965 = vmatpush.bf16.msrb.mxu1 %v863_v34  ;;  %v543_v45 = vcvt.s32.f32 %v287_v37  ;;  %v385_v17 = vunpack.c.1.s8 %v241_v43 }
  0x96   :  { %v777_v5 = vcvt.s32.f32 %v521_v63  ;;  %v840_v19 = vpack.c.bf16 %v640_v11, %v632_v10  ;;  %v505_v21 = vunpack.c.0.s8 %v273_v52  ;;  %v513_v22 = vunpack.c.1.s8 %v273_v52 }
  0x97   :  { %194 = vmatmul.bf16.vlgmr.msra.gmra.mxu0 %v83_v54  ;;  %207 = vmatmul.bf16.vlgmr.msra.gmra.mxu1 %v83_v54  ;;  %v791_v53 = vpack.c.bf16 %v543_v45, %v535_v40  ;;  %v648_v54 = vcvt.s32.f32 %v392_v46  ;;  %v904_v24 = vpack.c.bf16 %v768_v16, %v760_v15  ;;  %v641_v25 = vcvt.s32.f32 %v385_v17 }
  0x98   :  { %927 = vmatpush.bf16.msra.mxu2 %v790_v39  ;;  %985 = vmatpush.bf16.msrb.mxu3 %v912_v1  ;;  %v913_v14 = vpack.c.bf16 %v785_v6, %v777_v5  ;;  %v360_v26 = vunpack.c.2.s8 %v232_v13  ;;  %v368_v27 = vunpack.c.3.s8 %v232_v13  ;;  %v761_v28 = vcvt.s32.f32 %v505_v21 }
  0x99   :  { %953 = vmatpush.bf16.msrb.mxu0 %v791_v53  ;;  %v848_v61 = vpack.c.bf16 %v656_v55, %v648_v54  ;;  %966 = vmatpush.bf16.msrb.mxu1 %v855_v57  ;;  %v769_v29 = vcvt.s32.f32 %v513_v22  ;;  %v488_v30 = vunpack.c.2.s8 %v264_v18  ;;  %v496_v31 = vunpack.c.3.s8 %v264_v18  ;;  %v224_v57 = vld [vmem:[#allocation7 + $0x50] sm:$0xff] }
  0x9a   :  { %v841_v33 = vpack.c.bf16 %v641_v25, %v633_v20  ;;  %v616_v34 = vcvt.s32.f32 %v360_v26  ;;  %v624_v35 = vcvt.s32.f32 %v368_v27  ;;  %v369_v40 = vunpack.c.3.s8 %v233_v23 }
  0x9b   :  { %v905_v37 = vpack.c.bf16 %v769_v29, %v761_v28  ;;  %v744_v38 = vcvt.s32.f32 %v488_v30  ;;  %v752_v39 = vcvt.s32.f32 %v496_v31  ;;  %v489_v43 = vunpack.c.2.s8 %v265_v32 }
  0x9c   :  { %972 = vmatpush.bf16.msrb.mxu2 %v848_v61  ;;  %986 = vmatpush.bf16.msrb.mxu3 %v904_v24  ;;  %v832_v41 = vpack.c.bf16 %v624_v35, %v616_v34  ;;  %v497_v44 = vunpack.c.3.s8 %v265_v32  ;;  %v625_v46 = vcvt.s32.f32 %v369_v40  ;;  %v344_v47 = vunpack.c.0.s8 %v232_v13 }
  0x9d   :  { %998 = vmatpush.bf16.msra.mxu0 %v849_v9  ;;  %1011 = vmatpush.bf16.msra.mxu1 %v913_v14  ;;  %v896_v45 = vpack.c.bf16 %v752_v39, %v744_v38  ;;  %v352_v48 = vunpack.c.1.s8 %v232_v13  ;;  %v745_v49 = vcvt.s32.f32 %v489_v43  ;;  %v472_v51 = vunpack.c.0.s8 %v264_v18 }
  0x9e   :  { %v753_v50 = vcvt.s32.f32 %v497_v44  ;;  %v480_v52 = vunpack.c.1.s8 %v264_v18  ;;  %v833_v53 = vpack.c.bf16 %v625_v46, %v617_v42  ;;  %v600_v54 = vcvt.s32.f32 %v344_v47 }
  0x9f   :  { %v608_v55 = vcvt.s32.f32 %v352_v48  ;;  %v345_v56 = vunpack.c.0.s8 %v233_v23  ;;  %v728_v59 = vcvt.s32.f32 %v472_v51  ;;  %v353_v61 = vunpack.c.1.s8 %v233_v23  ;;  %v216_v51 = vld [vmem:[#allocation7 + $0x10] sm:$0xff] }
  0xa0   :  { %973 = vmatpush.bf16.msrb.mxu2 %v840_v19  ;;  %987 = vmatpush.bf16.msrb.mxu3 %v896_v45  ;;  %v897_v58 = vpack.c.bf16 %v753_v50, %v745_v49  ;;  %v736_v60 = vcvt.s32.f32 %v480_v52  ;;  %v473_v1 = vunpack.c.0.s8 %v265_v32  ;;  %v481_v2 = vunpack.c.1.s8 %v265_v32  ;;  %v248_v52 = vld [vmem:[#allocation7 + $0x110] sm:$0xff] }
  0xa1   :  { %999 = vmatpush.bf16.msra.mxu0 %v841_v33  ;;  %1012 = vmatpush.bf16.msra.mxu1 %v905_v37  ;;  %v824_v63 = vpack.c.bf16 %v608_v55, %v600_v54  ;;  %v601_v0 = vcvt.s32.f32 %v345_v56  ;;  %v609_v5 = vcvt.s32.f32 %v353_v61  ;;  %v328_v6 = vunpack.c.2.s8 %v224_v57 }
  0xa2   :  { %v888_v4 = vpack.c.bf16 %v736_v60, %v728_v59  ;;  %v336_v7 = vunpack.c.3.s8 %v224_v57  ;;  %v729_v8 = vcvt.s32.f32 %v473_v1  ;;  %v737_v9 = vcvt.s32.f32 %v481_v2 }
  0xa3   :  { %v456_v10 = vunpack.c.2.s8 %v256_v62  ;;  %v464_v11 = vunpack.c.3.s8 %v256_v62  ;;  %v825_v13 = vpack.c.bf16 %v609_v5, %v601_v0  ;;  %v584_v14 = vcvt.s32.f32 %v328_v6 }
  0xa4   :  { %974 = vmatpush.bf16.msrb.mxu2 %v832_v41  ;;  %988 = vmatpush.bf16.msrb.mxu3 %v888_v4  ;;  %v592_v15 = vcvt.s32.f32 %v336_v7  ;;  %v329_v16 = vunpack.c.2.s8 %v225_v3  ;;  %v889_v17 = vpack.c.bf16 %v737_v9, %v729_v8  ;;  %v337_v20 = vunpack.c.3.s8 %v225_v3 }
  0xa5   :  { %1000 = vmatpush.bf16.msra.mxu0 %v833_v53  ;;  %1013 = vmatpush.bf16.msra.mxu1 %v897_v58  ;;  %v712_v18 = vcvt.s32.f32 %v456_v10  ;;  %v720_v19 = vcvt.s32.f32 %v464_v11  ;;  %v457_v23 = vunpack.c.2.s8 %v257_v12  ;;  %v465_v24 = vunpack.c.3.s8 %v257_v12  ;;  %v217_v53 = vld [vmem:[#allocation7 + $0x18] sm:$0xff] }
  0xa6   :  { %v816_v21 = vpack.c.bf16 %v592_v15, %v584_v14  ;;  %v585_v22 = vcvt.s32.f32 %v329_v16  ;;  %v593_v26 = vcvt.s32.f32 %v337_v20  ;;  %v312_v27 = vunpack.c.0.s8 %v224_v57  ;;  %v249_v58 = vld [vmem:[#allocation7 + $0x118] sm:$0xff] }
  0xa7   :  { %v880_v25 = vpack.c.bf16 %v720_v19, %v712_v18  ;;  %v320_v28 = vunpack.c.1.s8 %v224_v57  ;;  %v713_v29 = vcvt.s32.f32 %v457_v23  ;;  %v721_v30 = vcvt.s32.f32 %v465_v24 }
  0xa8   :  { %975 = vmatpush.bf16.msrb.mxu2 %v824_v63  ;;  %v440_v31 = vunpack.c.0.s8 %v256_v62  ;;  %v448_v32 = vunpack.c.1.s8 %v256_v62  ;;  %v817_v33 = vpack.c.bf16 %v593_v26, %v585_v22  ;;  %v568_v34 = vcvt.s32.f32 %v312_v27 }
  0xa9   :  { %1001 = vmatpush.bf16.msra.mxu0 %v825_v13  ;;  %1014 = vmatpush.bf16.msra.mxu1 %v889_v17  ;;  %v576_v35 = vcvt.s32.f32 %v320_v28  ;;  %v313_v36 = vunpack.c.0.s8 %v225_v3  ;;  %v881_v37 = vpack.c.bf16 %v721_v30, %v713_v29  ;;  %v321_v40 = vunpack.c.1.s8 %v225_v3  ;;  %v242_v30 = vld [vmem:[#allocation7 + $0xe0] sm:$0xff] }
  0xaa   :  { %989 = vmatpush.bf16.msrb.mxu3 %v880_v25  ;;  %v696_v38 = vcvt.s32.f32 %v440_v31  ;;  %v704_v39 = vcvt.s32.f32 %v448_v32  ;;  %v441_v43 = vunpack.c.0.s8 %v257_v12  ;;  %v449_v44 = vunpack.c.1.s8 %v257_v12  ;;  %v274_v31 = vld [vmem:[#allocation7 + $0x1e0] sm:$0xff]  ;;  %v243_v32 = vld [vmem:[#allocation7 + $0xe8] sm:$0xff] }
  0xab   :  { %v808_v41 = vpack.c.bf16 %v576_v35, %v568_v34  ;;  %v569_v42 = vcvt.s32.f32 %v313_v36  ;;  %v577_v46 = vcvt.s32.f32 %v321_v40  ;;  %v296_v54 = vunpack.c.2.s8 %v216_v51 }
  0xac   :  { %976 = vmatpush.bf16.msrb.mxu2 %v816_v21  ;;  %v872_v45 = vpack.c.bf16 %v704_v39, %v696_v38  ;;  %v697_v47 = vcvt.s32.f32 %v441_v43  ;;  %v705_v48 = vcvt.s32.f32 %v449_v44  ;;  %v304_v55 = vunpack.c.3.s8 %v216_v51 }
  0xad   :  { %1002 = vmatpush.bf16.msra.mxu0 %v817_v33  ;;  %1015 = vmatpush.bf16.msra.mxu1 %v881_v37  ;;  %v809_v49 = vpack.c.bf16 %v577_v46, %v569_v42  ;;  %v424_v56 = vunpack.c.2.s8 %v248_v52  ;;  %v432_v57 = vunpack.c.3.s8 %v248_v52  ;;  %v297_v59 = vunpack.c.2.s8 %v217_v53  ;;  %v275_v33 = vld [vmem:[#allocation7 + $0x1e8] sm:$0xff] }
  0xae   :  { %990 = vmatpush.bf16.msrb.mxu3 %v872_v45  ;;  %v873_v50 = vpack.c.bf16 %v705_v48, %v697_v47  ;;  %v305_v60 = vunpack.c.3.s8 %v217_v53  ;;  %v425_v61 = vunpack.c.2.s8 %v249_v58  ;;  %v433_v62 = vunpack.c.3.s8 %v249_v58 }
  0xaf   :  { %v552_v63 = vcvt.s32.f32 %v296_v54  ;;  %v560_v0 = vcvt.s32.f32 %v304_v55  ;;  %v680_v1 = vcvt.s32.f32 %v424_v56  ;;  %v688_v2 = vcvt.s32.f32 %v432_v57  ;;  %v234_v56 = vld [vmem:[#allocation7 + $0xa0] sm:$0xff] }
  0xb0   :  { %977 = vmatpush.bf16.msrb.mxu2 %v808_v41  ;;  %v553_v3 = vcvt.s32.f32 %v297_v59  ;;  %v561_v4 = vcvt.s32.f32 %v305_v60  ;;  %v681_v5 = vcvt.s32.f32 %v425_v61  ;;  %v689_v8 = vcvt.s32.f32 %v433_v62  ;;  %v266_v61 = vld [vmem:[#allocation7 + $0x1a0] sm:$0xff] }
  0xb1   :  { %1003 = vmatpush.bf16.msra.mxu0 %v809_v49  ;;  %1016 = vmatpush.bf16.msra.mxu1 %v873_v50  ;;  %v800_v6 = vpack.c.bf16 %v560_v0, %v552_v63  ;;  %v864_v7 = vpack.c.bf16 %v688_v2, %v680_v1  ;;  %v280_v9 = vunpack.c.0.s8 %v216_v51  ;;  %v288_v11 = vunpack.c.1.s8 %v216_v51  ;;  %v1515_v51 = vld [vmem:[#allocation2 + $0x1] sm:$0x3] }
  0xb2   :  { %v801_v10 = vpack.c.bf16 %v561_v4, %v553_v3  ;;  %v408_v12 = vunpack.c.0.s8 %v248_v52  ;;  %v416_v13 = vunpack.c.1.s8 %v248_v52  ;;  %v865_v14 = vpack.c.bf16 %v689_v8, %v681_v5 }
  0xb3   :  { %991 = vmatpush.bf16.msrb.mxu3 %v864_v7  ;;  %v536_v15 = vcvt.s32.f32 %v280_v9  ;;  %v281_v16 = vunpack.c.0.s8 %v217_v53  ;;  %v289_v17 = vunpack.c.1.s8 %v217_v53  ;;  %v544_v18 = vcvt.s32.f32 %v288_v11 }
  0xb4   :  { %978 = vmatpush.bf16.msrb.mxu2 %v800_v6  ;;  %v664_v19 = vcvt.s32.f32 %v408_v12  ;;  %v672_v20 = vcvt.s32.f32 %v416_v13  ;;  %v409_v21 = vunpack.c.0.s8 %v249_v58  ;;  %v417_v24 = vunpack.c.1.s8 %v249_v58 }
  0xb5   :  { %1004 = vmatpush.bf16.msra.mxu0 %v801_v10  ;;  %1017 = vmatpush.bf16.msra.mxu1 %v865_v14  ;;  %v537_v22 = vcvt.s32.f32 %v281_v16  ;;  %v545_v23 = vcvt.s32.f32 %v289_v17  ;;  %v792_v25 = vpack.c.bf16 %v544_v18, %v536_v15  ;;  %v394_v35 = vunpack.c.2.s8 %v242_v30  ;;  %v235_v10 = vld [vmem:[#allocation7 + $0xa8] sm:$0xff] }
  0xb6   :  { %v856_v26 = vpack.c.bf16 %v672_v20, %v664_v19  ;;  %v665_v27 = vcvt.s32.f32 %v409_v21  ;;  %v673_v29 = vcvt.s32.f32 %v417_v24  ;;  %v402_v36 = vunpack.c.3.s8 %v242_v30  ;;  %v267_v15 = vld [vmem:[#allocation7 + $0x1a8] sm:$0xff] }
  0xb7   :  { %v793_v28 = vpack.c.bf16 %v545_v23, %v537_v22  ;;  %v522_v37 = vunpack.c.2.s8 %v274_v31  ;;  %v530_v38 = vunpack.c.3.s8 %v274_v31  ;;  %v395_v39 = vunpack.c.2.s8 %v243_v32 }
  0xb8   :  { %979 = vmatpush.bf16.msrb.mxu2 %v792_v25  ;;  %992 = vmatpush.bf16.msrb.mxu3 %v856_v26  ;;  %v857_v34 = vpack.c.bf16 %v673_v29, %v665_v27  ;;  %v403_v40 = vunpack.c.3.s8 %v243_v32  ;;  %v523_v41 = vunpack.c.2.s8 %v275_v33  ;;  %v531_v42 = vunpack.c.3.s8 %v275_v33 }
  0xb9   :  { %1005 = vmatpush.bf16.msra.mxu0 %v793_v28  ;;  %v378_v43 = vunpack.c.0.s8 %v242_v30  ;;  %v386_v44 = vunpack.c.1.s8 %v242_v30  ;;  %v506_v45 = vunpack.c.0.s8 %v274_v31  ;;  %v514_v46 = vunpack.c.1.s8 %v274_v31  ;;  %v1563_v28 = vld [vmem:[#allocation7 + $0x60] sm:$0xff] }
  0xba   :  { %1018 = vmatpush.bf16.msra.mxu1 %v857_v34  ;;  %v1507_v47 = vcvt.s32.f32 %v394_v35  ;;  %v1509_v48 = vcvt.s32.f32 %v402_v36  ;;  %v1511_v49 = vcvt.s32.f32 %v522_v37  ;;  %v1513_v50 = vcvt.s32.f32 %v530_v38 }
  0xbb   :  { %v1517_v52 = vcvt.s32.f32 %v395_v39  ;;  %v1519_v53 = vcvt.s32.f32 %v403_v40  ;;  %v1521_v54 = vcvt.s32.f32 %v523_v41  ;;  %v1523_v55 = vcvt.s32.f32 %v531_v42 }
  0xbc   :  { %v1525_v57 = vcvt.s32.f32 %v378_v43  ;;  %v1527_v58 = vcvt.s32.f32 %v386_v44  ;;  %v1529_v59 = vcvt.s32.f32 %v506_v45  ;;  %v379_v60 = vunpack.c.0.s8 %v243_v32 }
  0xbd   :  { %v1531_v62 = vcvt.s32.f32 %v514_v46  ;;  %v387_v63 = vunpack.c.1.s8 %v243_v32  ;;  %v507_v0 = vunpack.c.0.s8 %v275_v33  ;;  %v515_v1 = vunpack.c.1.s8 %v275_v33  ;;  %v1565_v33 = vld [vmem:[#allocation7 + $0x160] sm:$0xff] }
  0xbe   :  { %v182_v2 = vperm.slane %v1515_v51, 0  ;;  %v183_v3 = vperm.slane %v1515_v51, 1  ;;  %v362_v4 = vunpack.c.2.s8 %v234_v56  ;;  %v370_v5 = vunpack.c.3.s8 %v234_v56  ;;  %v1641_v51 = vld [vmem:[#allocation7 + $0x20] sm:$0xff] }
  0xbf   :  { %v490_v8 = vunpack.c.2.s8 %v266_v61  ;;  %v498_v9 = vunpack.c.3.s8 %v266_v61  ;;  %v1545_v14 = vcvt.s32.f32 %v379_v60  ;;  %v1549_v17 = vcvt.s32.f32 %v387_v63  ;;  %v1587_v63 = vld [vmem:[#allocation7 + $0x68] sm:$0xff] }
  0xc0   :  { %v1551_v18 = vcvt.s32.f32 %v507_v0  ;;  %v1553_v19 = vcvt.s32.f32 %v515_v1  ;;  %v1555_v20 = vcvt.s32.f32 %v362_v4  ;;  %v1557_v21 = vcvt.s32.f32 %v370_v5 }
  0xc1   :  { %v363_v22 = vunpack.c.2.s8 %v235_v10  ;;  %v371_v23 = vunpack.c.3.s8 %v235_v10  ;;  %v1559_v24 = vcvt.s32.f32 %v490_v8  ;;  %v1561_v25 = vcvt.s32.f32 %v498_v9 }
  0xc2   :  { %v491_v26 = vunpack.c.2.s8 %v267_v15  ;;  %v499_v27 = vunpack.c.3.s8 %v267_v15  ;;  %v346_v29 = vunpack.c.0.s8 %v234_v56  ;;  %v354_v30 = vunpack.c.1.s8 %v234_v56 }
  0xc3   :  { %v474_v31 = vunpack.c.0.s8 %v266_v61  ;;  %v482_v32 = vunpack.c.1.s8 %v266_v61  ;;  %v347_v34 = vunpack.c.0.s8 %v235_v10  ;;  %v355_v35 = vunpack.c.1.s8 %v235_v10 }
  0xc4   :  { %v475_v36 = vunpack.c.0.s8 %v267_v15  ;;  %v483_v37 = vunpack.c.1.s8 %v267_v15  ;;  %v1567_v38 = vcvt.s32.f32 %v363_v22  ;;  %v1569_v39 = vcvt.s32.f32 %v371_v23 }
  0xc5   :  { %v330_v40 = vunpack.c.2.s8 %v1563_v28  ;;  %v338_v41 = vunpack.c.3.s8 %v1563_v28  ;;  %v1573_v42 = vcvt.s32.f32 %v491_v26  ;;  %v1575_v43 = vcvt.s32.f32 %v499_v27 }
  0xc6   :  { %v458_v44 = vunpack.c.2.s8 %v1565_v33  ;;  %v466_v45 = vunpack.c.3.s8 %v1565_v33  ;;  %v1579_v46 = vcvt.s32.f32 %v346_v29  ;;  %v1581_v56 = vcvt.s32.f32 %v354_v30  ;;  %v259_v29 = vld [vmem:[#allocation7 + $0x168] sm:$0xff] }
  0xc7   :  { %v1583_v60 = vcvt.s32.f32 %v474_v31  ;;  %v1585_v61 = vcvt.s32.f32 %v482_v32  ;;  %v1589_v0 = vcvt.s32.f32 %v347_v34  ;;  %v1591_v1 = vcvt.s32.f32 %v355_v35 }
  0xc8   :  { %v1593_v4 = vcvt.s32.f32 %v475_v36  ;;  %v1595_v5 = vcvt.s32.f32 %v483_v37  ;;  %v1601_v10 = vcvt.s32.f32 %v330_v40  ;;  %v1603_v15 = vcvt.s32.f32 %v338_v41  ;;  %v1649_v37 = vld [vmem:[#allocation7 + $0x28] sm:$0xff] }
  0xc9   :  { %v1605_v22 = vcvt.s32.f32 %v458_v44  ;;  %v1607_v23 = vcvt.s32.f32 %v466_v45  ;;  %v331_v26 = vunpack.c.2.s8 %v1587_v63  ;;  %v339_v27 = vunpack.c.3.s8 %v1587_v63 }
  0xca   :  { %2044 = vst [vmem:[#allocation12_spill] sm:$0xff] %v1601_v10  ;;  %v459_v31 = vunpack.c.2.s8 %v259_v29  ;;  %v467_v41 = vunpack.c.3.s8 %v259_v29  ;;  %v314_v8 = vunpack.c.0.s8 %v1563_v28  ;;  %v443_v32 = vunpack.c.0.s8 %v259_v29 }
  0xcb   :  { %2045 = vst [vmem:[#allocation13_spill] sm:$0xff] %v1603_v15  ;;  %v1635_v40 = vcvt.s32.f32 %v331_v26  ;;  %v1637_v30 = vcvt.s32.f32 %v339_v27  ;;  %v315_v26 = vunpack.c.0.s8 %v1587_v63  ;;  %v323_v27 = vunpack.c.1.s8 %v1587_v63 }
  0xcc   :  { %2046 = vst [vmem:[#allocation14_spill] sm:$0xff] %v1605_v22  ;;  %v1655_v16 = vcvt.s32.f32 %v459_v31  ;;  %v298_v13 = vunpack.c.2.s8 %v1641_v51  ;;  %v306_v12 = vunpack.c.3.s8 %v1641_v51  ;;  %v1662_v63 = vcvt.s32.f32 %v467_v41  ;;  %v1667_v31 = vld [vmem:[#allocation7 + $0x128] sm:$0xff] }
  0xcd   :  { %2047 = vst [vmem:[#allocation15_spill] sm:$0xff] %v1607_v23  ;;  %v1671_v6 = vcvt.s32.f32 %v314_v8  ;;  %v2049_v10 = vpack.c.bf16 %v1509_v48, %v1507_v47  ;;  %v2050_v15 = vpack.c.bf16 %v1513_v50, %v1511_v49  ;;  %v2052_v47 = vpack.c.bf16 %v1523_v55, %v1521_v54 }
  0xce   :  { %v1699_v48 = vcvt.s32.f32 %v298_v13  ;;  %v1701_v49 = vcvt.s32.f32 %v306_v12  ;;  %v883_v54 = vpack.c.bf16 %v1662_v63, %v1655_v16  ;;  %v282_v55 = vunpack.c.0.s8 %v1641_v51  ;;  %v268_v63 = vld [vmem:[#allocation7 + $0x1b0] sm:$0xff] }
  0xcf   :  { %v290_v12 = vunpack.c.1.s8 %v1641_v51  ;;  %v2053_v13 = vpack.c.bf16 %v1527_v58, %v1525_v57  ;;  %v2055_v51 = vpack.c.bf16 %v1549_v17, %v1545_v14  ;;  %v2056_v57 = vpack.c.bf16 %v1553_v19, %v1551_v18  ;;  %v244_v18 = vld [vmem:[#allocation7 + $0xf0] sm:$0xff] }
  0xd0   :  { %v276_v19 = vld [vmem:[#allocation7 + $0x1f0] sm:$0xff] }
 0x114   :  { %v195_v35 = vpop.f32.mrf.mxu0  ;;  %v208_v36 = vpop.f32.mrf.mxu1 }
 0x115   :  { %v196_v45 = vadd.f32 %v195_v35, %v182_v2  ;;  %v209_v34 = vadd.f32 %v208_v36, %v183_v3  ;;  %v322_v2 = vunpack.c.1.s8 %v1563_v28  ;;  %v1643_v3 = vld [vmem:[#allocation7 + $0x120] sm:$0xff]  ;;  %v442_v35 = vunpack.c.0.s8 %v1565_v33 }
 0x116   :  { %v450_v36 = vunpack.c.1.s8 %v1565_v33  ;;  %v451_v28 = vunpack.c.1.s8 %v259_v29  ;;  %v426_v33 = vunpack.c.2.s8 %v1643_v3  ;;  %v307_v29 = vunpack.c.3.s8 %v1649_v37 }
 0x117   :  { %v212_v9 = vmax.f32 %v196_v45, 0.0  ;;  %v213_v44 = vmax.f32 %v209_v34, 0.0  ;;  %v1673_v22 = vcvt.s32.f32 %v322_v2  ;;  %v1675_v41 = vcvt.s32.f32 %v442_v35 }
 0x118   :  { %v1677_v23 = vcvt.s32.f32 %v450_v36  ;;  %v1691_v8 = vcvt.s32.f32 %v451_v28  ;;  %v2051_v2 = vpack.c.bf16 %v1519_v53, %v1517_v52  ;;  %v1703_v50 = vcvt.s32.f32 %v426_v33 }
 0x119   :  { %v1651_v45 = vpack.c.bf16 %v212_v9, %v212_v9  ;;  %v1653_v34 = vpack.c.bf16 %v213_v44, %v213_v44  ;;  %v434_v9 = vunpack.c.3.s8 %v1643_v3  ;;  %v299_v44 = vunpack.c.2.s8 %v1649_v37 }
 0x11a   :  { %v1710_v35 = vcvt.s32.f32 %v307_v29  ;;  %v435_v52 = vunpack.c.3.s8 %v1667_v31  ;;  %v819_v53 = vpack.c.bf16 %v1637_v30, %v1635_v40  ;;  %v2054_v36 = vpack.c.bf16 %v1531_v62, %v1529_v59 }
 0x11b   :  { %2048 = vst [vmem:[#allocation16_spill] sm:$0xff] %v1651_v45  ;;  %928 = vmatmul.bf16.vlgmr.msra.gmra.mxu2 %v1651_v45  ;;  %941 = vmatmul.bf16.vlgmr.msra.gmra.mxu3 %v1653_v34  ;;  %v410_v28 = vunpack.c.0.s8 %v1643_v3  ;;  %v418_v33 = vunpack.c.1.s8 %v1643_v3  ;;  %v1753_v29 = vcvt.s32.f32 %v290_v12  ;;  %v508_v62 = vunpack.c.0.s8 %v276_v19 }
 0x11c   :  { %954 = vmatmul.bf16.vlgmr.msrb.gmra.mxu0 %v1651_v45  ;;  %967 = vmatmul.bf16.vlgmr.msrb.gmra.mxu1 %v1653_v34  ;;  %v197_v11 = vpop.f32.mrf.mxu0  ;;  %v210_v7 = vpop.f32.mrf.mxu1  ;;  %v1685_v45 = vcvt.s32.f32 %v315_v26  ;;  %v810_v26 = vpack.c.bf16 %v1673_v22, %v1671_v6  ;;  %v516_v59 = vunpack.c.1.s8 %v276_v19  ;;  %v492_v6 = vunpack.c.2.s8 %v268_v63 }
 0x11d   :  { %1024 = vmatpush.bf16.msra.mxu2 %v2049_v10  ;;  %1037 = vmatpush.bf16.msra.mxu3 %v2050_v15  ;;  %v1687_v11 = vcvt.s32.f32 %v323_v27  ;;  %v1689_v7 = vcvt.s32.f32 %v443_v32  ;;  %v427_v10 = vunpack.c.2.s8 %v1667_v31  ;;  %v1706_v15 = vcvt.s32.f32 %v434_v9 }
 0x11e   :  { %1050 = vmatpush.bf16.msrb.mxu0 %v2051_v2  ;;  %1063 = vmatpush.bf16.msrb.mxu1 %v2052_v47  ;;  %v1708_v32 = vcvt.s32.f32 %v299_v44  ;;  %v874_v27 = vpack.c.bf16 %v1677_v23, %v1675_v41  ;;  %v1749_v9 = vcvt.s32.f32 %v435_v52  ;;  %v1751_v44 = vcvt.s32.f32 %v282_v55 }
 0x11f   :  { %v811_v58 = vpack.c.bf16 %v1687_v11, %v1685_v45  ;;  %v1747_v17 = vcvt.s32.f32 %v427_v10  ;;  %v283_v2 = vunpack.c.0.s8 %v1649_v37  ;;  %v291_v47 = vunpack.c.1.s8 %v1649_v37 }
 0x120   :  { %v2057_v10 = vpack.c.bf16 %v1557_v21, %v1555_v20  ;;  %v2058_v52 = vpack.c.bf16 %v1561_v25, %v1559_v24  ;;  %v1767_v55 = vcvt.s32.f32 %v410_v28  ;;  %v1769_v12 = vcvt.s32.f32 %v418_v33 }
 0x121   :  { %1025 = vmatpush.bf16.msra.mxu2 %v2053_v13  ;;  %1038 = vmatpush.bf16.msra.mxu3 %v2054_v36  ;;  %v1757_v13 = vld [vmem:[#allocation7 + $0xf8] sm:$0xff]  ;;  %v419_v37 = vunpack.c.1.s8 %v1667_v31  ;;  %v2060_v20 = vpack.c.bf16 %v1575_v43, %v1573_v42  ;;  %v396_v21 = vunpack.c.2.s8 %v244_v18  ;;  %v524_v24 = vunpack.c.2.s8 %v276_v19 }
 0x122   :  { %1051 = vmatpush.bf16.msrb.mxu0 %v2055_v51  ;;  %1064 = vmatpush.bf16.msrb.mxu1 %v2056_v57  ;;  %v1759_v36 = vld [vmem:[#allocation7 + $0x1f8] sm:$0xff]  ;;  %v411_v51 = vunpack.c.0.s8 %v1667_v31  ;;  %v2059_v57 = vpack.c.bf16 %v1569_v39, %v1567_v38  ;;  %v532_v25 = vunpack.c.3.s8 %v276_v19  ;;  %v397_v28 = vunpack.c.2.s8 %v1757_v13 }
 0x123   :  { %v405_v33 = vunpack.c.3.s8 %v1757_v13  ;;  %v533_v31 = vunpack.c.3.s8 %v1759_v36  ;;  %v1783_v14 = vcvt.s32.f32 %v283_v2  ;;  %v1785_v38 = vcvt.s32.f32 %v291_v47  ;;  %v2065_v47 = vld [vmem:[#allocation16_spill] sm:$0xff] }
 0x124   :  { %v380_v39 = vunpack.c.0.s8 %v244_v18  ;;  %v2061_v42 = vpack.c.bf16 %v1581_v56, %v1579_v46  ;;  %v2062_v43 = vpack.c.bf16 %v1585_v61, %v1583_v60  ;;  %v1795_v3 = vcvt.s32.f32 %v419_v37 }
 0x125   :  { %1026 = vmatpush.bf16.msra.mxu2 %v2057_v10  ;;  %1039 = vmatpush.bf16.msra.mxu3 %v2058_v52  ;;  %v404_v10 = vunpack.c.3.s8 %v244_v18  ;;  %v525_v52 = vunpack.c.2.s8 %v1759_v36  ;;  %v2063_v2 = vpack.c.bf16 %v1591_v1, %v1589_v0  ;;  %v1803_v46 = vcvt.s32.f32 %v396_v21 }
 0x126   :  { %1052 = vmatpush.bf16.msrb.mxu0 %v2059_v57  ;;  %1065 = vmatpush.bf16.msrb.mxu1 %v2060_v20  ;;  %v388_v57 = vunpack.c.1.s8 %v244_v18  ;;  %v1793_v20 = vcvt.s32.f32 %v411_v51  ;;  %v2064_v18 = vpack.c.bf16 %v1595_v5, %v1593_v4  ;;  %v1807_v60 = vcvt.s32.f32 %v524_v24  ;;  %v2067_v24 = vld [vmem:[#allocation12_spill] sm:$0xff] }
 0x127   :  { %v1805_v56 = vcvt.s32.f32 %v404_v10  ;;  %v1809_v61 = vcvt.s32.f32 %v532_v25  ;;  %v1813_v19 = vcvt.s32.f32 %v397_v28  ;;  %v1815_v0 = vcvt.s32.f32 %v405_v33  ;;  %v2066_v10 = vld [vmem:[#allocation13_spill] sm:$0xff]  ;;  %v2069_v28 = vld [vmem:[#allocation15_spill] sm:$0xff]  ;;  %v2070_v33 = vld [vmem:[#allocation14_spill] sm:$0xff] }
 0x128   :  { %v1817_v1 = vcvt.s32.f32 %v525_v52  ;;  %v1819_v4 = vcvt.s32.f32 %v533_v31  ;;  %v867_v5 = vpack.c.bf16 %v1749_v9, %v1747_v17  ;;  %v1825_v51 = vcvt.s32.f32 %v380_v39 }
 0x129   :  { %1027 = vmatpush.bf16.msra.mxu2 %v2061_v42  ;;  %1040 = vmatpush.bf16.msra.mxu3 %v2062_v43  ;;  %v1827_v37 = vcvt.s32.f32 %v388_v57  ;;  %v381_v21 = vunpack.c.0.s8 %v1757_v13  ;;  %v2068_v25 = vpack.c.bf16 %v2066_v10, %v2067_v24  ;;  %v2071_v52 = vpack.c.bf16 %v2069_v28, %v2070_v33 }
 0x12a   :  { %1053 = vmatpush.bf16.msrb.mxu0 %v2063_v2  ;;  %1066 = vmatpush.bf16.msrb.mxu1 %v2064_v18  ;;  %v794_v31 = vpack.c.bf16 %v1753_v29, %v1751_v44  ;;  %v1838_v42 = vcvt.s32.f32 %v508_v62  ;;  %v1840_v17 = vcvt.s32.f32 %v516_v59  ;;  %v389_v9 = vunpack.c.1.s8 %v1757_v13  ;;  %v236_v62 = vld [vmem:[#allocation7 + $0xb0] sm:$0xff] }
 0x12b   :  { %980 = vmatmul.bf16.vlgmr.msrb.gmra.mxu2 %v2065_v47  ;;  %993 = vmatmul.bf16.vlgmr.msrb.gmra.mxu3 %v1653_v34  ;;  %v858_v39 = vpack.c.bf16 %v1769_v12, %v1767_v55  ;;  %v795_v44 = vpack.c.bf16 %v1785_v38, %v1783_v14  ;;  %v859_v59 = vpack.c.bf16 %v1795_v3, %v1793_v20  ;;  %v1865_v14 = vcvt.s32.f32 %v381_v21  ;;  %v1869_v55 = vld [vmem:[#allocation7 + $0x1b8] sm:$0xff] }
 0x12c   :  { %1006 = vmatmul.bf16.vlgmr.msra.gmra.mxu0 %v2065_v47  ;;  %1019 = vmatmul.bf16.vlgmr.msra.gmra.mxu1 %v1653_v34  ;;  %v852_v29 = vpack.c.bf16 %v1805_v56, %v1803_v46  ;;  %v916_v30 = vpack.c.bf16 %v1809_v61, %v1807_v60  ;;  %v853_v16 = vpack.c.bf16 %v1815_v0, %v1813_v19  ;;  %v509_v3 = vunpack.c.0.s8 %v1759_v36 }
 0x12d   :  { %1028 = vmatpush.bf16.msra.mxu2 %v2068_v25  ;;  %1041 = vmatpush.bf16.msra.mxu3 %v2071_v52  ;;  %v917_v40 = vpack.c.bf16 %v1819_v4, %v1817_v1  ;;  %v517_v13 = vunpack.c.1.s8 %v1759_v36  ;;  %v908_v12 = vpack.c.bf16 %v1840_v17, %v1838_v42  ;;  %v1879_v38 = vcvt.s32.f32 %v389_v9  ;;  %v1986_v42 = vld [vmem:[#allocation7 + $0x30] sm:$0xff] }
 0x12e   :  { %1054 = vmatpush.bf16.msrb.mxu0 %v819_v53  ;;  %1067 = vmatpush.bf16.msrb.mxu1 %v883_v54  ;;  %v237_v53 = vld [vmem:[#allocation7 + $0xb8] sm:$0xff]  ;;  %v844_v54 = vpack.c.bf16 %v1827_v37, %v1825_v51  ;;  %v364_v57 = vunpack.c.2.s8 %v236_v62  ;;  %v372_v43 = vunpack.c.3.s8 %v236_v62  ;;  %v2072_v36 = vpack.c.bf16 %v1691_v8, %v1689_v7 }
 0x12f   :  { %v500_v22 = vunpack.c.3.s8 %v268_v63  ;;  %v373_v23 = vunpack.c.3.s8 %v237_v53  ;;  %v493_v41 = vunpack.c.2.s8 %v1869_v55  ;;  %v348_v20 = vunpack.c.0.s8 %v236_v62 }
 0x130   :  { %v356_v2 = vunpack.c.1.s8 %v236_v62  ;;  %v1889_v18 = vcvt.s32.f32 %v509_v3  ;;  %v1891_v21 = vcvt.s32.f32 %v517_v13  ;;  %v476_v45 = vunpack.c.0.s8 %v268_v63 }
 0x131   :  { %1029 = vmatpush.bf16.msra.mxu2 %v810_v26  ;;  %1042 = vmatpush.bf16.msra.mxu3 %v874_v27  ;;  %v365_v26 = vunpack.c.2.s8 %v237_v53  ;;  %v501_v27 = vunpack.c.3.s8 %v1869_v55  ;;  %v484_v11 = vunpack.c.1.s8 %v268_v63  ;;  %v2073_v7 = vpack.c.bf16 %v1701_v49, %v1699_v48 }
 0x132   :  { %1055 = vmatpush.bf16.msrb.mxu0 %v811_v58  ;;  %1068 = vmatpush.bf16.msrb.mxu1 %v2072_v36  ;;  %v2074_v8 = vpack.c.bf16 %v1706_v15, %v1703_v50  ;;  %v1899_v58 = vcvt.s32.f32 %v364_v57  ;;  %v1901_v10 = vcvt.s32.f32 %v372_v43  ;;  %v349_v24 = vunpack.c.0.s8 %v237_v53  ;;  %v1914_v50 = vld [vmem:[#allocation7 + $0x70] sm:$0xff] }
 0x133   :  { %v357_v25 = vunpack.c.1.s8 %v237_v53  ;;  %v2075_v28 = vpack.c.bf16 %v1710_v35, %v1708_v32  ;;  %v1906_v33 = vcvt.s32.f32 %v492_v6  ;;  %v1908_v52 = vcvt.s32.f32 %v500_v22 }
 0x134   :  { %v1910_v48 = vcvt.s32.f32 %v365_v26  ;;  %v1912_v49 = vcvt.s32.f32 %v373_v23  ;;  %v1916_v15 = vcvt.s32.f32 %v493_v41  ;;  %v1918_v9 = vcvt.s32.f32 %v501_v27 }
 0x135   :  { %1030 = vmatpush.bf16.msra.mxu2 %v2073_v7  ;;  %1043 = vmatpush.bf16.msra.mxu3 %v2074_v8  ;;  %v1920_v62 = vcvt.s32.f32 %v348_v20  ;;  %v1922_v63 = vcvt.s32.f32 %v356_v2  ;;  %v1924_v32 = vcvt.s32.f32 %v476_v45  ;;  %v1926_v35 = vcvt.s32.f32 %v484_v11  ;;  %v1988_v7 = vld [vmem:[#allocation7 + $0x130] sm:$0xff] }
 0x136   :  { %1056 = vmatpush.bf16.msrb.mxu0 %v2075_v28  ;;  %1069 = vmatpush.bf16.msrb.mxu1 %v867_v5  ;;  %v477_v5 = vunpack.c.0.s8 %v1869_v55  ;;  %v485_v53 = vunpack.c.1.s8 %v1869_v55  ;;  %v845_v3 = vpack.c.bf16 %v1879_v38, %v1865_v14  ;;  %v1932_v13 = vcvt.s32.f32 %v349_v24  ;;  %v229_v55 = vld [vmem:[#allocation7 + $0x78] sm:$0xff] }
 0x137   :  { %v1934_v57 = vcvt.s32.f32 %v357_v25  ;;  %v332_v43 = vunpack.c.2.s8 %v1914_v50  ;;  %v909_v36 = vpack.c.bf16 %v1891_v21, %v1889_v18  ;;  %v836_v6 = vpack.c.bf16 %v1901_v10, %v1899_v58  ;;  %v261_v38 = vld [vmem:[#allocation7 + $0x178] sm:$0xff] }
 0x138   :  { %v828_v14 = vpack.c.bf16 %v1922_v63, %v1920_v62  ;;  %v892_v46 = vpack.c.bf16 %v1926_v35, %v1924_v32  ;;  %v1963_v56 = vcvt.s32.f32 %v477_v5  ;;  %v1965_v60 = vcvt.s32.f32 %v485_v53  ;;  %v221_v25 = vld [vmem:[#allocation7 + $0x38] sm:$0xff] }
 0x139   :  { %1031 = vmatpush.bf16.msra.mxu2 %v794_v31  ;;  %1044 = vmatpush.bf16.msra.mxu3 %v858_v39  ;;  %v900_v31 = vpack.c.bf16 %v1908_v52, %v1906_v33  ;;  %v260_v39 = vld [vmem:[#allocation7 + $0x170] sm:$0xff]  ;;  %v340_v61 = vunpack.c.3.s8 %v1914_v50  ;;  %v829_v19 = vpack.c.bf16 %v1934_v57, %v1932_v13  ;;  %v1972_v0 = vcvt.s32.f32 %v332_v43 }
 0x13a   :  { %1057 = vmatpush.bf16.msrb.mxu0 %v795_v44  ;;  %1070 = vmatpush.bf16.msrb.mxu1 %v859_v59  ;;  %v837_v44 = vpack.c.bf16 %v1912_v49, %v1910_v48  ;;  %v901_v59 = vpack.c.bf16 %v1918_v9, %v1916_v15  ;;  %v460_v1 = vunpack.c.2.s8 %v260_v39  ;;  %v468_v4 = vunpack.c.3.s8 %v260_v39  ;;  %v253_v49 = vld [vmem:[#allocation7 + $0x138] sm:$0xff] }
 0x13b   :  { %v316_v22 = vunpack.c.0.s8 %v1914_v50  ;;  %v324_v26 = vunpack.c.1.s8 %v1914_v50  ;;  %v444_v23 = vunpack.c.0.s8 %v260_v39  ;;  %v452_v41 = vunpack.c.1.s8 %v260_v39 }
 0x13c   :  { %1032 = vmatmul.bf16.vlgmr.msra.gmra.mxu2 %v2065_v47  ;;  %1045 = vmatmul.bf16.vlgmr.msra.gmra.mxu3 %v1653_v34  ;;  %v893_v27 = vpack.c.bf16 %v1965_v60, %v1963_v56  ;;  %v596_v20 = vcvt.s32.f32 %v340_v61  ;;  %v317_v2 = vunpack.c.0.s8 %v229_v55  ;;  %v325_v18 = vunpack.c.1.s8 %v229_v55 }
 0x13d   :  { %1076 = vmatpush.bf16.msrb.mxu2 %v852_v29  ;;  %1089 = vmatpush.bf16.msrb.mxu3 %v916_v30  ;;  %v333_v29 = vunpack.c.2.s8 %v229_v55  ;;  %v341_v30 = vunpack.c.3.s8 %v229_v55  ;;  %v716_v51 = vcvt.s32.f32 %v460_v1  ;;  %v724_v37 = vcvt.s32.f32 %v468_v4 }
 0x13e   :  { %1102 = vmatpush.bf16.msra.mxu0 %v853_v16  ;;  %1115 = vmatpush.bf16.msra.mxu1 %v917_v40  ;;  %v461_v16 = vunpack.c.2.s8 %v261_v38  ;;  %v469_v40 = vunpack.c.3.s8 %v261_v38  ;;  %v453_v21 = vunpack.c.1.s8 %v261_v38  ;;  %v572_v8 = vcvt.s32.f32 %v316_v22 }
 0x13f   :  { %1058 = vmatmul.bf16.vlgmr.msrb.gmra.mxu0 %v2065_v47  ;;  %1071 = vmatmul.bf16.vlgmr.msrb.gmra.mxu1 %v1653_v34  ;;  %v589_v17 = vcvt.s32.f32 %v333_v29  ;;  %v580_v58 = vcvt.s32.f32 %v324_v26  ;;  %v700_v10 = vcvt.s32.f32 %v444_v23  ;;  %v708_v24 = vcvt.s32.f32 %v452_v41 }
 0x140   :  { %v717_v45 = vcvt.s32.f32 %v461_v16  ;;  %v725_v11 = vcvt.s32.f32 %v469_v40  ;;  %v573_v28 = vcvt.s32.f32 %v317_v2  ;;  %v581_v33 = vcvt.s32.f32 %v325_v18 }
 0x141   :  { %1077 = vmatpush.bf16.msrb.mxu2 %v844_v54  ;;  %1090 = vmatpush.bf16.msrb.mxu3 %v908_v12  ;;  %v445_v54 = vunpack.c.0.s8 %v261_v38  ;;  %v597_v12 = vcvt.s32.f32 %v341_v30  ;;  %v300_v52 = vunpack.c.2.s8 %v1986_v42  ;;  %v308_v48 = vunpack.c.3.s8 %v1986_v42 }
 0x142   :  { %1103 = vmatpush.bf16.msra.mxu0 %v845_v3  ;;  %1116 = vmatpush.bf16.msra.mxu1 %v909_v36  ;;  %v709_v15 = vcvt.s32.f32 %v453_v21  ;;  %v428_v9 = vunpack.c.2.s8 %v1988_v7  ;;  %v436_v32 = vunpack.c.3.s8 %v1988_v7  ;;  %v820_v35 = vpack.c.bf16 %v596_v20, %v1972_v0 }
 0x143   :  { %v701_v50 = vcvt.s32.f32 %v445_v54  ;;  %v884_v5 = vpack.c.bf16 %v724_v37, %v716_v51  ;;  %v301_v53 = vunpack.c.2.s8 %v221_v25  ;;  %v309_v3 = vunpack.c.3.s8 %v221_v25 }
 0x144   :  { %v821_v13 = vpack.c.bf16 %v597_v12, %v589_v17  ;;  %v885_v57 = vpack.c.bf16 %v725_v11, %v717_v45  ;;  %v429_v43 = vunpack.c.2.s8 %v253_v49  ;;  %v437_v36 = vunpack.c.3.s8 %v253_v49  ;;  %v2006_v12 = vld [vmem:[#allocation2 + $0xb] sm:$0xff]  ;;  %v2009_v11 = vld [vmem:[#allocation2 + $0x3] sm:$0xff] }
 0x145   :  { %1078 = vmatpush.bf16.msrb.mxu2 %v836_v6  ;;  %1091 = vmatpush.bf16.msrb.mxu3 %v900_v31  ;;  %v812_v6 = vpack.c.bf16 %v580_v58, %v572_v8  ;;  %v876_v31 = vpack.c.bf16 %v708_v24, %v700_v10  ;;  %v813_v39 = vpack.c.bf16 %v581_v33, %v573_v28  ;;  %v564_v55 = vcvt.s32.f32 %v308_v48 }
 0x146   :  { %1104 = vmatpush.bf16.msra.mxu0 %v837_v44  ;;  %1117 = vmatpush.bf16.msra.mxu1 %v901_v59  ;;  %v556_v44 = vcvt.s32.f32 %v300_v52  ;;  %v877_v59 = vpack.c.bf16 %v709_v15, %v701_v50  ;;  %v684_v38 = vcvt.s32.f32 %v428_v9  ;;  %v692_v56 = vcvt.s32.f32 %v436_v32 }
 0x147   :  { %v557_v60 = vcvt.s32.f32 %v301_v53  ;;  %v565_v61 = vcvt.s32.f32 %v309_v3  ;;  %v284_v62 = vunpack.c.0.s8 %v1986_v42  ;;  %v292_v63 = vunpack.c.1.s8 %v1986_v42 }
 0x148   :  { %v420_v0 = vunpack.c.1.s8 %v1988_v7  ;;  %v285_v1 = vunpack.c.0.s8 %v221_v25  ;;  %v293_v4 = vunpack.c.1.s8 %v221_v25  ;;  %v413_v29 = vunpack.c.0.s8 %v253_v49 }
 0x149   :  { %1079 = vmatpush.bf16.msrb.mxu2 %v828_v14  ;;  %1092 = vmatpush.bf16.msrb.mxu3 %v892_v46  ;;  %v685_v14 = vcvt.s32.f32 %v429_v43  ;;  %v693_v46 = vcvt.s32.f32 %v437_v36  ;;  %v421_v30 = vunpack.c.1.s8 %v253_v49  ;;  %v804_v16 = vpack.c.bf16 %v564_v55, %v556_v44 }
 0x14a   :  { %1105 = vmatpush.bf16.msra.mxu0 %v829_v19  ;;  %1118 = vmatpush.bf16.msra.mxu1 %v893_v27  ;;  %v412_v19 = vunpack.c.0.s8 %v1988_v7  ;;  %v868_v40 = vpack.c.bf16 %v692_v56, %v684_v38  ;;  %v805_v22 = vpack.c.bf16 %v565_v61, %v557_v60  ;;  %v540_v26 = vcvt.s32.f32 %v284_v62 }
 0x14b   :  { %v869_v23 = vpack.c.bf16 %v693_v46, %v685_v14  ;;  %v548_v41 = vcvt.s32.f32 %v292_v63  ;;  %v676_v20 = vcvt.s32.f32 %v420_v0  ;;  %v541_v2 = vcvt.s32.f32 %v285_v1 }
 0x14c   :  { %v668_v27 = vcvt.s32.f32 %v412_v19  ;;  %v549_v18 = vcvt.s32.f32 %v293_v4  ;;  %v669_v51 = vcvt.s32.f32 %v413_v29  ;;  %v677_v37 = vcvt.s32.f32 %v421_v30 }
 0x14d   :  { %1080 = vmatpush.bf16.msrb.mxu2 %v820_v35  ;;  %1093 = vmatpush.bf16.msrb.mxu3 %v884_v5  ;;  %v796_v54 = vpack.c.bf16 %v548_v41, %v540_v26  ;;  %v1131_v45 = vperm.slane %v2006_v12, 1  ;;  %v1157_v10 = vperm.slane %v2009_v11, 1  ;;  %v1130_v25 = vperm.slane %v2006_v12, 0 }
 0x14e   :  { %1106 = vmatpush.bf16.msra.mxu0 %v821_v13  ;;  %1119 = vmatpush.bf16.msra.mxu1 %v885_v57  ;;  %v860_v21 = vpack.c.bf16 %v676_v20, %v668_v27  ;;  %v797_v42 = vpack.c.bf16 %v549_v18, %v541_v2  ;;  %v861_v17 = vpack.c.bf16 %v677_v37, %v669_v51  ;;  %v1132_v63 = vperm.slane %v2006_v12, 2 }
 0x14f   :  { %v1133_v46 = vperm.slane %v2006_v12, 3  ;;  %v1134_v0 = vperm.slane %v2006_v12, 4  ;;  %v1158_v4 = vperm.slane %v2009_v11, 2  ;;  %v1135_v30 = vperm.slane %v2006_v12, 5 }
 0x150   :  { %v1160_v20 = vperm.slane %v2009_v11, 4  ;;  %v1161_v18 = vperm.slane %v2009_v11, 5 }
 0x151   :  { %1081 = vmatpush.bf16.msrb.mxu2 %v812_v6  ;;  %1094 = vmatpush.bf16.msrb.mxu3 %v876_v31 }
 0x152   :  { %1107 = vmatpush.bf16.msra.mxu0 %v813_v39  ;;  %1120 = vmatpush.bf16.msra.mxu1 %v877_v59 }
 0x155   :  { %1082 = vmatpush.bf16.msrb.mxu2 %v804_v16  ;;  %1095 = vmatpush.bf16.msrb.mxu3 %v868_v40 }
 0x156   :  { %1108 = vmatpush.bf16.msra.mxu0 %v805_v22  ;;  %1121 = vmatpush.bf16.msra.mxu1 %v869_v23  ;;  %v1137_v22 = vperm.slane %v2006_v12, 7  ;;  %v1159_v23 = vperm.slane %v2009_v11, 3 }
 0x159   :  { %1083 = vmatpush.bf16.msrb.mxu2 %v796_v54  ;;  %1096 = vmatpush.bf16.msrb.mxu3 %v860_v21  ;;  %v1163_v54 = vperm.slane %v2009_v11, 7  ;;  %v1136_v21 = vperm.slane %v2006_v12, 6 }
 0x15a   :  { %1109 = vmatpush.bf16.msra.mxu0 %v797_v42  ;;  %1122 = vmatpush.bf16.msra.mxu1 %v861_v17 }
 0x15c   :  { %1084 = vmatmul.bf16.vlgmr.msrb.gmra.mxu2 %v2065_v47  ;;  %1097 = vmatmul.bf16.vlgmr.msrb.gmra.mxu3 %v1653_v34 }
 0x15d   :  { %1110 = vmatmul.bf16.vlgmr.msra.gmra.mxu0 %v2065_v47  ;;  %1123 = vmatmul.bf16.vlgmr.msra.gmra.mxu1 %v1653_v34  ;;  %v1156_v34 = vperm.slane %v2009_v11, 0 }
 0x199   :  { %v955_v7 = vpop.f32.mrf.mxu0  ;;  %v968_v8 = vpop.f32.mrf.mxu1 }
 0x19a   :  { %v969_v58 = vadd.f32 %v968_v8, %v955_v7 }
 0x19c   :  { %v1147_v24 = vmul.f32 %v1131_v45, %v969_v58  ;;  %v1162_v58 = vperm.slane %v2009_v11, 6 }
 0x19e   :  { %v929_v28 = vpop.f32.mrf.mxu2  ;;  %v942_v33 = vpop.f32.mrf.mxu3  ;;  %v1173_v52 = vadd.f32 %v1157_v10, %v1147_v24 }
 0x19f   :  { %v943_v47 = vadd.f32 %v942_v33, %v929_v28 }
 0x1a0   :  { %v1188_v15 = vrot.slane %v1173_v52, 7 }
 0x1a1   :  { %v1146_v48 = vmul.f32 %v1130_v25, %v943_v47  ;;  %v957_v49 = vpop.f32.mrf.mxu0  ;;  %v970_v50 = vpop.f32.mrf.mxu1 }
 0x1a3   :  { %v1172_v9 = vadd.f32 %v1156_v34, %v1146_v48 }
 0x1a5   :  { %v2014_v32 = vsel %vm1195_vm0, %v1172_v9, %v1188_v15 }
 0x1a6   :  { %v931_v35 = vpop.f32.mrf.mxu2  ;;  %v944_v5 = vpop.f32.mrf.mxu3 }
 0x1a9   :  { %v1007_v53 = vpop.f32.mrf.mxu0  ;;  %v1020_v3 = vpop.f32.mrf.mxu1 }
 0x1aa   :  { %v1021_v14 = vadd.f32 %v1020_v3, %v1007_v53 }
 0x1ac   :  { %v1149_v26 = vmul.f32 %v1133_v46, %v1021_v14 }
 0x1ae   :  { %v981_v13 = vpop.f32.mrf.mxu2  ;;  %v994_v57 = vpop.f32.mrf.mxu3  ;;  %v1175_v42 = vadd.f32 %v1159_v23, %v1149_v26 }
 0x1af   :  { %v995_v62 = vadd.f32 %v994_v57, %v981_v13 }
 0x1b0   :  { %v1190_v47 = vrot.slane %v1175_v42, 5 }
 0x1b1   :  { %v1009_v43 = vpop.f32.mrf.mxu0  ;;  %v1022_v36 = vpop.f32.mrf.mxu1  ;;  %v1148_v1 = vmul.f32 %v1132_v63, %v995_v62 }
 0x1b3   :  { %v1174_v2 = vadd.f32 %v1158_v4, %v1148_v1 }
 0x1b5   :  { %v1189_v10 = vrot.slane %v1174_v2, 6 }
 0x1b6   :  { %v983_v6 = vpop.f32.mrf.mxu2  ;;  %v996_v31 = vpop.f32.mrf.mxu3 }
 0x1b7   :  { %v1198_v49 = vsel %vm1197_vm1, %v1189_v10, %v1190_v47 }
 0x1b8   :  { %v1200_v53 = vsel %vm1199_vm2, %v2014_v32, %v1198_v49 }
 0x1bc   :  { %v1059_v39 = vpop.f32.mrf.mxu0  ;;  %v1072_v44 = vpop.f32.mrf.mxu1 }
 0x1bd   :  { %v1073_v29 = vadd.f32 %v1072_v44, %v1059_v39 }
 0x1bf   :  { %v1033_v59 = vpop.f32.mrf.mxu2  ;;  %v1046_v55 = vpop.f32.mrf.mxu3  ;;  %v1151_v51 = vmul.f32 %v1135_v30, %v1073_v29 }
 0x1c0   :  { %v1047_v19 = vadd.f32 %v1046_v55, %v1033_v59 }
 0x1c1   :  { %v1177_v24 = vadd.f32 %v1161_v18, %v1151_v51 }
 0x1c2   :  { %v1150_v27 = vmul.f32 %v1134_v0, %v1047_v19 }
 0x1c3   :  { %v1192_v12 = vrot.slane %v1177_v24, 3 }
 0x1c4   :  { %v1061_v38 = vpop.f32.mrf.mxu0  ;;  %v1074_v56 = vpop.f32.mrf.mxu1  ;;  %v1176_v7 = vadd.f32 %v1160_v20, %v1150_v27 }
 0x1c6   :  { %v1191_v34 = vrot.slane %v1176_v7, 4 }
 0x1c7   :  { %v1035_v60 = vpop.f32.mrf.mxu2  ;;  %v1048_v61 = vpop.f32.mrf.mxu3 }
 0x1c8   :  { %v1202_v35 = vsel %vm1201_vm3, %v1191_v34, %v1192_v12 }
 0x1da   :  { %v1111_v16 = vpop.f32.mrf.mxu0  ;;  %v1124_v40 = vpop.f32.mrf.mxu1 }
 0x1db   :  { %v1125_v41 = vadd.f32 %v1124_v40, %v1111_v16 }
 0x1dd   :  { %v1153_v37 = vmul.f32 %v1137_v22, %v1125_v41 }
 0x1df   :  { %v1085_v17 = vpop.f32.mrf.mxu2  ;;  %v1098_v45 = vpop.f32.mrf.mxu3  ;;  %v1179_v25 = vadd.f32 %v1163_v54, %v1153_v37 }
 0x1e0   :  { %v1099_v8 = vadd.f32 %v1098_v45, %v1085_v17 }
 0x1e1   :  { %v1194_v50 = vrot.slane %v1179_v25, 1 }
 0x1e2   :  { %v1152_v28 = vmul.f32 %v1136_v21, %v1099_v8  ;;  %v1113_v33 = vpop.f32.mrf.mxu0  ;;  %v1126_v52 = vpop.f32.mrf.mxu1 }
 0x1e4   :  { %v1178_v48 = vadd.f32 %v1162_v58, %v1152_v28 }
 0x1e6   :  { %v1193_v15 = vrot.slane %v1178_v48, 2 }
 0x1e7   :  { %v1087_v9 = vpop.f32.mrf.mxu2  ;;  %v1100_v11 = vpop.f32.mrf.mxu3 }
 0x1e8   :  { %v1204_v5 = vsel %vm1203_vm4, %v1193_v15, %v1194_v50 }
 0x1e9   :  { %v1206_v3 = vsel %vm1205_vm5, %v1202_v35, %v1204_v5 }
 0x1ea   :  { %v1208_v13 = vsel %vm1207_vm6, %v1200_v53, %v1206_v3 }
 0x1eb   :  { %1210 = vmax.xlane.f32.xlu0 %v1208_v13 }
 0x25e   :  { %v1211_v57 = vpop.xlane.xlu0 %1210 }
 0x25f   :  { %v1212_v43 = vsub.f32 %v1208_v13, %v1211_v57 }
 0x261   :  { %v1213_v36 = vmul.f32 1.442695, %v1212_v43 }
 0x263   :  { %1341 = vpow2.f32 %v1213_v36 }
 0x269   :  { %v1342_v6 = vpop.eup %1341 }
 0x26a   :  { %1215 = vadd.xlane.f32.xlu1 %v1342_v6 }
 0x2dd   :  { %v1216_v31 = vpop.xlane.xlu1 %1215 }
 0x2de   :  { %1343 = vrcp.f32 %v1216_v31  ;;  %v1228_v55 = vand.u32 2147483648, %v1216_v31  ;;  %v1226_v56 = vand.u32 2147483647, %v1216_v31  ;;  %vm1222_vm8 = vweird.f32 %v1216_v31 }
 0x2e0   :  { %v1229_v32 = vor.u32 1.1754944e-38, %v1228_v55  ;;  %vm1227_vm10 = vcmp.eq.f32.partialorder %v1226_v56, 8.507059e+37 }
 0x2e4   :  { %v1344_v39 = vpop.eup %1343 }
 0x2e5   :  { %v1218_v44 = vmul.f32 %v1344_v39, %v1216_v31  ;;  %vm1223_vm7 = vweird.f32 %v1344_v39 }
 0x2e6   :  { %vm1224_vm9 = vmor %vm1222_vm8, %vm1223_vm7 }
 0x2e7   :  { %v1219_v59 = vsub.f32 1.0, %v1218_v44 }
 0x2e9   :  { %v1220_v38 = vmul.f32 %v1344_v39, %v1219_v59 }
 0x2eb   :  { %v1221_v60 = vadd.f32 %v1344_v39, %v1220_v38 }
 0x2ed   :  { %v1225_v61 = vsel %vm1224_vm9, %v1344_v39, %v1221_v60 }
 0x2ee   :  { %v1230_v62 = vsel %vm1227_vm10, %v1229_v32, %v1225_v61 }
 0x2ef   :  { %v1231_v63 = vmul.f32 %v1342_v6, %v1230_v62 }
 0x2f1   :  { %1232 = vst [vmem:[#allocation8] sm:$0xff] %v1231_v63 }
 0x2f2   :  { %1243 = dma.vmem_to_hbm [thread:$0]  %s1239_s12, 128, %s1241_s15, [#allocation4]  }
 0x2f3   :  { %1445 = dma.done.wait [#allocation4], 128  }
 0x2f4   :  { %1446 = vsyncadd [#allocation4], 4294967168 }
 0x2f5   :  { %1248 = vsyncpa [#allocation3], 1 }
 0x2f6   :  { %1249 = vsyncpa [#allocation6], 1 }
 0x2f7   :  { %1250 = vsyncpa [#allocation4], 1 }

</bundles_post_ra>
